<compile_context>
chip_gen: v6e
topology: v6e:2x2x1
jax: 0.10.0
libtpu: 0.0.40
codegen_flags: <defaults>
</compile_context>

<pallas_src>
import functools

import jax
import jax.numpy as jnp
from jax.experimental import pallas as pl
from jax.experimental.pallas import tpu as pltpu


def _round_up(x, m):
    return ((x + m - 1) // m) * m


def _boundary_kernel(tok_ref, ent_ref, mask_ref, wt_ref, we_ref, bsum_ref,
                     wbp_ref, bbp_ref, cls_ref, p_ref, ent_proj_ref,
                     *, e_chunk):
    """One grid step = (batch row b, token tile t).

    tok_ref:      (1, tT, H)     raw token embeddings tile
    ent_ref:      (1, E_pad, H)  raw entity embeddings for batch b (resident)
    mask_ref:     (1, 1, tT)     token mask tile (1.0 valid / 0.0 invalid)
    wt_ref:       (H, H)         token linear weight  (in x out), resident
    we_ref:       (H, H)         entity linear weight (in x out), resident
    bsum_ref:     (1, H)         bt + be (both biases folded together)
    wbp_ref:      (1, H)         boundary predictor weight vector
    bbp_ref:      (1, 1)         boundary predictor bias
    cls_ref:      (1, E_pad, tT) logits tile
    p_ref:        (1, E_pad, tT) sigmoid tile
    ent_proj_ref: (E_pad, H) f32 scratch: entity projection for batch b
    """
    t_idx = pl.program_id(1)

    # Entity projection computed once per batch row and reused across all
    # token tiles (scratch persists across grid steps; t is innermost).
    @pl.when(t_idx == 0)
    def _():
        ent = ent_ref[0]                                              # (E_pad, H)
        proj = jnp.dot(ent, we_ref[...], preferred_element_type=jnp.float32)
        ent_proj_ref[...] = proj + bsum_ref[...].astype(jnp.float32)

    # Token projection (bias already folded into ent_proj -> one add saved).
    tok = tok_ref[0]                                                  # (tT, H)
    tok_proj = jnp.dot(tok, wt_ref[...], preferred_element_type=jnp.float32)

    w_bp = wbp_ref[...].astype(jnp.float32)[None, :, :]               # (1, 1, H)
    b_bp = bbp_ref[...].astype(jnp.float32)                           # (1, 1)
    mask = mask_ref[0].astype(jnp.float32)                            # (1, tT)
    neg = jnp.float32(-10000.0)

    e_pad = ent_proj_ref.shape[0]
    n_chunks = e_pad // e_chunk
    # Static loop over small entity chunks keeps the (e_chunk, tT, H) f32
    # intermediate bounded in VMEM (entity counts are small in this model).
    for c in range(n_chunks):
        ent_c = ent_proj_ref[pl.ds(c * e_chunk, e_chunk), :]          # (ec, H)
        m = jnp.maximum(tok_proj[None, :, :] + ent_c[:, None, :], 0.0)  # (ec, tT, H)
        scores = jnp.sum(m * w_bp, axis=-1) + b_bp                    # (ec, tT)
        scores = jnp.where(mask > 0.5, scores, neg)
        cls_ref[0, pl.ds(c * e_chunk, e_chunk), :] = scores.astype(cls_ref.dtype)
        p_ref[0, pl.ds(c * e_chunk, e_chunk), :] = (
            jax.nn.sigmoid(scores).astype(p_ref.dtype))


def entity_boundary_predictor(token_embedding, entity_embedding, token_mask,
                              wt, bt, we, be, w_bp, b_bp, *, e_chunk=8):
    """token_embedding (B,T,H), entity_embedding (B,E,H), token_mask (B,T) bool.
    Weights stored as (in, out); w_bp is (H,), b_bp scalar.
    Returns (cls, p) each of shape (B, E, T)."""
    B, T, H = token_embedding.shape
    E = entity_embedding.shape[1]
    dtype = token_embedding.dtype

    # Pad token axis to a multiple of 128 (lane-dense stores) and pick the
    # largest token tile that divides it; pad entity axis to a multiple of 8.
    T_pad = _round_up(max(T, 1), 128)
    tT = 512 if T_pad % 512 == 0 else (256 if T_pad % 256 == 0 else 128)
    n_t = T_pad // tT
    E_pad = _round_up(max(E, 1), e_chunk)

    tok_p = jnp.pad(token_embedding, ((0, 0), (0, T_pad - T), (0, 0)))
    ent_p = jnp.pad(entity_embedding, ((0, 0), (0, E_pad - E), (0, 0)))
    mask_p = jnp.pad(token_mask.astype(dtype), ((0, 0), (0, T_pad - T)))
    mask_p = mask_p.reshape(B, 1, T_pad)

    b_sum = (bt + be).reshape(1, H).astype(dtype)      # exact: biases commute through the add
    w_bp2 = w_bp.reshape(1, H).astype(dtype)
    b_bp2 = jnp.asarray(b_bp, dtype=dtype).reshape(1, 1)

    kernel = functools.partial(_boundary_kernel, e_chunk=e_chunk)

    cls_pad, p_pad = pl.pallas_call(
        kernel,
        out_shape=(jax.ShapeDtypeStruct((B, E_pad, T_pad), dtype),
                   jax.ShapeDtypeStruct((B, E_pad, T_pad), dtype)),
        grid_spec=pltpu.PrefetchScalarGridSpec(
            num_scalar_prefetch=0,
            grid=(B, n_t),
            in_specs=[
                pl.BlockSpec((1, tT, H), lambda b, t: (b, t, 0)),     # tokens tile
                pl.BlockSpec((1, E_pad, H), lambda b, t: (b, 0, 0)),  # entities (resident per b)
                pl.BlockSpec((1, 1, tT), lambda b, t: (b, 0, t)),     # mask tile
                pl.BlockSpec((H, H), lambda b, t: (0, 0)),            # Wt (resident)
                pl.BlockSpec((H, H), lambda b, t: (0, 0)),            # We (resident)
                pl.BlockSpec((1, H), lambda b, t: (0, 0)),            # bt + be
                pl.BlockSpec((1, H), lambda b, t: (0, 0)),            # w_bp
                pl.BlockSpec((1, 1), lambda b, t: (0, 0)),            # b_bp
            ],
            out_specs=[
                pl.BlockSpec((1, E_pad, tT), lambda b, t: (b, 0, t)),
                pl.BlockSpec((1, E_pad, tT), lambda b, t: (b, 0, t)),
            ],
            scratch_shapes=[pltpu.VMEM((E_pad, H), jnp.float32)],
        ),
        compiler_params=pltpu.CompilerParams(
            dimension_semantics=("parallel", "arbitrary"),
            vmem_limit_bytes=64 * 1024 * 1024,
        ),
    )(tok_p, ent_p, mask_p, wt.astype(dtype), we.astype(dtype),
      b_sum, w_bp2, b_bp2)

    return cls_pad[:, :E, :T], p_pad[:, :E, :T]


class EntityBoundaryPredictorPallas:
    """JAX/Pallas equivalent of EntityBoundaryPredictor."""

    def __init__(self, hidden_size, squeeze=True, key=None, dtype=jnp.float32):
        self.hidden_size = hidden_size
        self.squeeze = squeeze
        if key is None:
            key = jax.random.PRNGKey(0)
        k = jax.random.split(key, 6)
        s = 0.02
        H = hidden_size
        # Linear weights stored pre-transposed to (in, out).
        self.wt = (s * jax.random.normal(k[0], (H, H))).astype(dtype)
        self.bt = (s * jax.random.normal(k[1], (H,))).astype(dtype)
        self.we = (s * jax.random.normal(k[2], (H, H))).astype(dtype)
        self.be = (s * jax.random.normal(k[3], (H,))).astype(dtype)
        self.w_bp = (s * jax.random.normal(k[4], (H,))).astype(dtype)
        self.b_bp = (s * jax.random.normal(k[5], ())).astype(dtype)
        # TODO(synk): bf16 weight/activation path (f32 accumulate) is a further
        # HBM/MXU win but is left off to match the f32 torch module exactly.

    def __call__(self, token_embedding, entity_embedding, token_mask):
        cls, p = entity_boundary_predictor(
            token_embedding, entity_embedding, token_mask,
            self.wt, self.bt, self.we, self.be, self.w_bp, self.b_bp)
        if not self.squeeze:
            cls, p = cls[..., None], p[..., None]
        return cls, p


def _reference(mod, tok, ent, mask):
    """Pure-JAX reference for correctness checking."""
    a = jnp.einsum("bth,hk->btk", tok, mod.wt) + mod.bt
    c = jnp.einsum("beh,hk->bek", ent, mod.we) + mod.be
    m = jax.nn.relu(a[:, None, :, :] + c[:, :, None, :])       # (B, E, T, H)
    cls = jnp.einsum("beth,h->bet", m, mod.w_bp) + mod.b_bp
    cls = jnp.where(mask[:, None, :], cls, jnp.asarray(-10000.0, cls.dtype))
    p = jax.nn.sigmoid(cls)
    if not mod.squeeze:
        cls, p = cls[..., None], p[..., None]
    return cls, p


if __name__ == "__main__":
    # Small synthetic config: batch=2, token seq=8, entities=4, hidden=32.
    B, T, E, H = 2, 8, 4, 32

    key = jax.random.PRNGKey(0)
    k = jax.random.split(key, 3)
    token_embedding = jax.random.normal(k[0], (B, T, H), jnp.float32)
    entity_embedding = jax.random.normal(k[1], (B, E, H), jnp.float32)
    lengths = jnp.array([6, 5], dtype=jnp.int32)
    token_mask = jnp.arange(T)[None, :] < lengths[:, None]      # (B, T) bool

    module = EntityBoundaryPredictorPallas(hidden_size=H, squeeze=True, key=k[2])

    cls_out, p_out = module(token_embedding, entity_embedding, token_mask)
    jax.block_until_ready((cls_out, p_out))

    cls_ref, p_ref = _reference(module, token_embedding, entity_embedding, token_mask)
    assert cls_out.shape == (B, E, T) and p_out.shape == (B, E, T)
    assert jnp.allclose(cls_out, cls_ref, atol=1e-4, rtol=1e-4)
    assert jnp.allclose(p_out, p_ref, atol=1e-5, rtol=1e-5)

    print("KERNEL_OK")
</pallas_src>

<mosaic_0001>
module attributes {stable_mosaic.version = 11 : i64} {
  func.func @_boundary_kernel(%arg0: i32, %arg1: i32, %arg2: memref<1x128x32xf32, #tpu.memory_space<vmem>>, %arg3: memref<1x8x32xf32, #tpu.memory_space<vmem>>, %arg4: memref<1x1x128xf32, #tpu.memory_space<vmem>>, %arg5: memref<32x32xf32, #tpu.memory_space<vmem>>, %arg6: memref<32x32xf32, #tpu.memory_space<vmem>>, %arg7: memref<1x32xf32, #tpu.memory_space<vmem>>, %arg8: memref<1x32xf32, #tpu.memory_space<vmem>>, %arg9: memref<1x1xf32, #tpu.memory_space<vmem>>, %arg10: memref<1x8x128xf32, #tpu.memory_space<vmem>>, %arg11: memref<1x8x128xf32, #tpu.memory_space<vmem>>, %arg12: memref<8x32xf32, #tpu.memory_space<vmem>>) attributes {dimension_semantics = [#tpu.dimension_semantics<parallel>, #tpu.dimension_semantics<arbitrary>], iteration_bounds = array<i64: 2, 1>, scalar_prefetch = 0 : i64, scratch_operands = 1 : i64, tpu.core_type = #tpu.core_type<tc>, window_params = [{transform_indices = @transform_0, window_bounds = array<i64: 1, 128, 32>}, {transform_indices = @transform_1, window_bounds = array<i64: 1, 8, 32>}, {transform_indices = @transform_2, window_bounds = array<i64: 1, 1, 128>}, {pipeline_mode = #tpu.pipeline_mode<synchronous>, transform_indices = @transform_3, window_bounds = array<i64: 32, 32>}, {pipeline_mode = #tpu.pipeline_mode<synchronous>, transform_indices = @transform_4, window_bounds = array<i64: 32, 32>}, {pipeline_mode = #tpu.pipeline_mode<synchronous>, transform_indices = @transform_5, window_bounds = array<i64: 1, 32>}, {pipeline_mode = #tpu.pipeline_mode<synchronous>, transform_indices = @transform_6, window_bounds = array<i64: 1, 32>}, {pipeline_mode = #tpu.pipeline_mode<synchronous>, transform_indices = @transform_7, window_bounds = array<i64: 1, 1>}, {transform_indices = @transform_8, window_bounds = array<i64: 1, 8, 128>}, {transform_indices = @transform_9, window_bounds = array<i64: 1, 8, 128>}]} {
    %c0_i32 = arith.constant 0 : i32
    %0 = arith.cmpi eq, %arg1, %c0_i32 : i32
    %1 = arith.extui %0 : i1 to i32
    %c0_i32_0 = arith.constant 0 : i32
    %2 = arith.cmpi ne, %1, %c0_i32_0 : i32
    scf.if %2 {
      %c0_25 = arith.constant 0 : index
      %c0_26 = arith.constant 0 : index
      %c0_27 = arith.constant 0 : index
      %42 = vector.load %arg3[%c0_25, %c0_26, %c0_27] : memref<1x8x32xf32, #tpu.memory_space<vmem>>, vector<1x8x32xf32>
      %43 = vector.shape_cast %42 : vector<1x8x32xf32> to vector<8x32xf32>
      %c0_28 = arith.constant 0 : index
      %c0_29 = arith.constant 0 : index
      %44 = vector.load %arg6[%c0_28, %c0_29] : memref<32x32xf32, #tpu.memory_space<vmem>>, vector<32x32xf32>
      %cst_30 = arith.constant dense<0.000000e+00> : vector<8x32xf32>
      %45 = tpu.matmul %43, %44, %cst_30 {dimension_numbers = #tpu.dot_dimension_numbers<[1], [0], [0], [1], [0, 0, 1, 1], [], []>} : vector<8x32xf32>, vector<32x32xf32>, vector<8x32xf32> -> vector<8x32xf32>
      %c0_31 = arith.constant 0 : index
      %c0_32 = arith.constant 0 : index
      %46 = vector.load %arg7[%c0_31, %c0_32] : memref<1x32xf32, #tpu.memory_space<vmem>>, vector<1x32xf32>
      %47 = vector.broadcast %46 : vector<1x32xf32> to vector<8x32xf32>
      %48 = arith.addf %45, %47 : vector<8x32xf32>
      %c0_33 = arith.constant 0 : index
      %c0_34 = arith.constant 0 : index
      %49 = vector.load %arg12[%c0_33, %c0_34] : memref<8x32xf32, #tpu.memory_space<vmem>>, vector<8x32xf32>
      tpu.vector_store %arg12[%c0_33, %c0_34], %48 {strides = array<i32>} : memref<8x32xf32, #tpu.memory_space<vmem>>, vector<8x32xf32>,
    } else {
    }
    %c0 = arith.constant 0 : index
    %c0_1 = arith.constant 0 : index
    %c0_2 = arith.constant 0 : index
    %3 = vector.load %arg2[%c0, %c0_1, %c0_2] : memref<1x128x32xf32, #tpu.memory_space<vmem>>, vector<1x128x32xf32>
    %4 = vector.shape_cast %3 : vector<1x128x32xf32> to vector<128x32xf32>
    %c0_3 = arith.constant 0 : index
    %c0_4 = arith.constant 0 : index
    %5 = vector.load %arg5[%c0_3, %c0_4] : memref<32x32xf32, #tpu.memory_space<vmem>>, vector<32x32xf32>
    %cst = arith.constant dense<0.000000e+00> : vector<128x32xf32>
    %6 = tpu.matmul %4, %5, %cst {dimension_numbers = #tpu.dot_dimension_numbers<[1], [0], [0], [1], [0, 0, 1, 1], [], []>} : vector<128x32xf32>, vector<32x32xf32>, vector<128x32xf32> -> vector<128x32xf32>
    %c0_5 = arith.constant 0 : index
    %c0_6 = arith.constant 0 : index
    %7 = vector.load %arg8[%c0_5, %c0_6] : memref<1x32xf32, #tpu.memory_space<vmem>>, vector<1x32xf32>
    %8 = vector.shape_cast %7 : vector<1x32xf32> to vector<1x1x32xf32>
    %c0_7 = arith.constant 0 : index
    %c0_8 = arith.constant 0 : index
    %9 = vector.load %arg9[%c0_7, %c0_8] : memref<1x1xf32, #tpu.memory_space<vmem>>, vector<1x1xf32>
    %c0_9 = arith.constant 0 : index
    %c0_10 = arith.constant 0 : index
    %c0_11 = arith.constant 0 : index
    %10 = vector.load %arg4[%c0_9, %c0_10, %c0_11] : memref<1x1x128xf32, #tpu.memory_space<vmem>>, vector<1x1x128xf32>
    %11 = vector.shape_cast %10 : vector<1x1x128xf32> to vector<1x128xf32>
    %c0_12 = arith.constant 0 : index
    %c0_13 = arith.constant 0 : index
    %12 = vector.load %arg12[%c0_12, %c0_13] : memref<8x32xf32, #tpu.memory_space<vmem>>, vector<8x32xf32>
    %13 = vector.shape_cast %6 : vector<128x32xf32> to vector<1x128x32xf32>
    %14 = vector.shape_cast %12 : vector<8x32xf32> to vector<8x1x32xf32>
    %15 = vector.broadcast %13 : vector<1x128x32xf32> to vector<8x128x32xf32>
    %16 = vector.broadcast %14 : vector<8x1x32xf32> to vector<8x128x32xf32>
    %17 = arith.addf %15, %16 : vector<8x128x32xf32>
    %cst_14 = arith.constant 0.000000e+00 : f32
    %18 = vector.broadcast %cst_14 : f32 to vector<8x128x32xf32>
    %19 = arith.maximumf %17, %18 : vector<8x128x32xf32>
    %20 = vector.broadcast %8 : vector<1x1x32xf32> to vector<8x128x32xf32>
    %21 = arith.mulf %19, %20 : vector<8x128x32xf32>
    %cst_15 = arith.constant dense<0.000000e+00> : vector<8x128xf32>
    %22 = vector.multi_reduction <add>, %21, %cst_15 [2] : vector<8x128x32xf32> to vector<8x128xf32>
    %23 = vector.broadcast %9 : vector<1x1xf32> to vector<8x128xf32>
    %24 = arith.addf %22, %23 : vector<8x128xf32>
    %cst_16 = arith.constant 5.000000e-01 : f32
    %25 = vector.broadcast %cst_16 : f32 to vector<1x128xf32>
    %26 = arith.cmpf ogt, %11, %25 : vector<1x128xf32>
    %cst_17 = arith.constant -1.000000e+04 : f32
    %27 = vector.shape_cast %26 : vector<1x128xi1> to vector<1x128xi1>
    %28 = vector.broadcast %27 : vector<1x128xi1> to vector<8x128xi1>
    %29 = vector.broadcast %cst_17 : f32 to vector<8x128xf32>
    %30 = arith.select %28, %24, %29 : vector<8x128xi1>, vector<8x128xf32>
    %c0_18 = arith.constant 0 : index
    %c0_19 = arith.constant 0 : index
    %c0_20 = arith.constant 0 : index
    %31 = vector.load %arg10[%c0_18, %c0_19, %c0_20] : memref<1x8x128xf32, #tpu.memory_space<vmem>>, vector<1x8x128xf32>
    %32 = vector.shape_cast %31 : vector<1x8x128xf32> to vector<8x128xf32>
    %33 = vector.shape_cast %30 : vector<8x128xf32> to vector<1x8x128xf32>
    tpu.vector_store %arg10[%c0_18, %c0_19, %c0_20], %33 {strides = array<i32>} : memref<1x8x128xf32, #tpu.memory_space<vmem>>, vector<1x8x128xf32>,
    %34 = arith.negf %30 : vector<8x128xf32>
    %35 = math.exp %34 : vector<8x128xf32>
    %cst_21 = arith.constant 1.000000e+00 : f32
    %36 = vector.broadcast %cst_21 : f32 to vector<8x128xf32>
    %37 = arith.addf %36, %35 : vector<8x128xf32>
    %38 = arith.divf %36, %37 : vector<8x128xf32>
    %c0_22 = arith.constant 0 : index
    %c0_23 = arith.constant 0 : index
    %c0_24 = arith.constant 0 : index
    %39 = vector.load %arg11[%c0_22, %c0_23, %c0_24] : memref<1x8x128xf32, #tpu.memory_space<vmem>>, vector<1x8x128xf32>
    %40 = vector.shape_cast %39 : vector<1x8x128xf32> to vector<8x128xf32>
    %41 = vector.shape_cast %38 : vector<8x128xf32> to vector<1x8x128xf32>
    tpu.vector_store %arg11[%c0_22, %c0_23, %c0_24], %41 {strides = array<i32>} : memref<1x8x128xf32, #tpu.memory_space<vmem>>, vector<1x8x128xf32>,
    return
  }
  func.func @transform_0(%arg0: i32, %arg1: i32) -> (i32, i32, i32) {
    %c0_i32 = arith.constant 0 : i32
    %c0_i32_0 = arith.constant 0 : i32
    return %arg0, %arg1, %c0_i32 : i32, i32, i32
  }
  func.func @transform_1(%arg0: i32, %arg1: i32) -> (i32, i32, i32) {
    %c0_i32 = arith.constant 0 : i32
    %c0_i32_0 = arith.constant 0 : i32
    %c0_i32_1 = arith.constant 0 : i32
    return %arg0, %c0_i32, %c0_i32_0 : i32, i32, i32
  }
  func.func @transform_2(%arg0: i32, %arg1: i32) -> (i32, i32, i32) {
    %c0_i32 = arith.constant 0 : i32
    %c0_i32_0 = arith.constant 0 : i32
    return %arg0, %c0_i32, %arg1 : i32, i32, i32
  }
  func.func @transform_3(%arg0: i32, %arg1: i32) -> (i32, i32) {
    %c0_i32 = arith.constant 0 : i32
    %c0_i32_0 = arith.constant 0 : i32
    %c0_i32_1 = arith.constant 0 : i32
    return %c0_i32, %c0_i32_0 : i32, i32
  }
  func.func @transform_4(%arg0: i32, %arg1: i32) -> (i32, i32) {
    %c0_i32 = arith.constant 0 : i32
    %c0_i32_0 = arith.constant 0 : i32
    %c0_i32_1 = arith.constant 0 : i32
    return %c0_i32, %c0_i32_0 : i32, i32
  }
  func.func @transform_5(%arg0: i32, %arg1: i32) -> (i32, i32) {
    %c0_i32 = arith.constant 0 : i32
    %c0_i32_0 = arith.constant 0 : i32
    %c0_i32_1 = arith.constant 0 : i32
    return %c0_i32, %c0_i32_0 : i32, i32
  }
  func.func @transform_6(%arg0: i32, %arg1: i32) -> (i32, i32) {
    %c0_i32 = arith.constant 0 : i32
    %c0_i32_0 = arith.constant 0 : i32
    %c0_i32_1 = arith.constant 0 : i32
    return %c0_i32, %c0_i32_0 : i32, i32
  }
  func.func @transform_7(%arg0: i32, %arg1: i32) -> (i32, i32) {
    %c0_i32 = arith.constant 0 : i32
    %c0_i32_0 = arith.constant 0 : i32
    %c0_i32_1 = arith.constant 0 : i32
    return %c0_i32, %c0_i32_0 : i32, i32
  }
  func.func @transform_8(%arg0: i32, %arg1: i32) -> (i32, i32, i32) {
    %c0_i32 = arith.constant 0 : i32
    %c0_i32_0 = arith.constant 0 : i32
    return %arg0, %c0_i32, %arg1 : i32, i32, i32
  }
  func.func @transform_9(%arg0: i32, %arg1: i32) -> (i32, i32, i32) {
    %c0_i32 = arith.constant 0 : i32
    %c0_i32_0 = arith.constant 0 : i32
    return %arg0, %c0_i32, %arg1 : i32, i32, i32
  }
}

</mosaic_0001>

<bundles_post_ra>
// kernel: tpu_custom_call.1
= control target key start
LH: loop header
LB: loop body
LE: loop exit
PB: predicated region body
PF: predicated region fallthrough
CT: control target
= control target key end

     0   :  { %s4407_s0 = inlined_call_operand.vmem [shape: f32[2,128,32], index: 0, kind: input, shape index: {}]   ;;  %s4408_s1 = inlined_call_operand.vmem [shape: f32[2,8,32], index: 1, kind: input, shape index: {}]   ;;  %s4409_s2 = inlined_call_operand.vmem [shape: f32[2,1,128], index: 2, kind: input, shape index: {}]   ;;  %s4410_s3 = inlined_call_operand.vmem [shape: f32[32,32], index: 3, kind: input, shape index: {}]   ;;  %s4411_s4 = inlined_call_operand.vmem [shape: f32[32,32], index: 4, kind: input, shape index: {}]   ;;  %s4412_s5 = inlined_call_operand.vmem [shape: f32[1,32], index: 5, kind: input, shape index: {}]   ;;  %s4413_s6 = inlined_call_operand.vmem [shape: f32[1,32], index: 6, kind: input, shape index: {}]   ;;  %s4414_s7 = inlined_call_operand.<no memory space> [shape: f32[1,1], index: 7, kind: input, shape index: {}]   ;;  %s4415_s8 = inlined_call_operand.hbm [shape: f32[2,8,128], index: 8, kind: output, shape index: {0}]   ;;  %s4416_s9 = inlined_call_operand.hbm [shape: f32[2,8,128], index: 9, kind: output, shape index: {1}]  }
   0x1   :  { %4426 = sst [smem:[#allocation16_spill]] %s4407_s0  ;;  %v15_v0 = vstv %s4414_s7 }
   0x2   :  { %16 = vst [vmem:[#allocation3] sm:$0x1] %v15_v0 }
   0x3   :  { %17 = vsyncpa [#allocation5], 0 }
   0x4   :  { %19 = vsyncpa [#allocation5 + $0x1], 0 }
   0x5   :  { %20 = vsyncpa [#allocation7], 0 }
   0x6   :  { %22 = vsyncpa [#allocation7 + $0x1], 0  ;;  %s3068_s11 = smov 0   ;;  %s3070_s12 = smov 0  }
   0x7   :  { %s3072_s13 = smov 0   ;;  %s3074_s14 = smov 0  }
   0x8   :  { %s3076_s15 = smov 0   ;;  %s3078_s16 = smov 0  }
   0x9 LB: > { %s2716_s7 = sadd.s32 4294967295, %s3007_s16   ;;  %s2717_s17 = sadd.s32 4294967294, %s3007_s16   ;;  %s3007_s16 = sphi %s3078_s16, %s28_s16   ;;  %s3003_s15 = sphi %s3076_s15, %s4453_s15   ;;  %s2999_s14 = sphi %s3074_s14, %s4452_s14   ;;  %s2995_s13 = sphi %s3072_s13, %s4451_s13   ;;  %s2991_s12 = sphi %s3070_s12, %s4450_s12   ;;  %s2987_s11 = sphi %s3068_s11, %s4449_s11  }
   0xa   : > { %s40_s18 = sadd.s32 1, %s3003_s15  ;;  %s236_s19 = sadd.s32 1, %s2995_s13 }
   0xb   : > { %p42_p0 = scmp.ge.s32.totalorder %s40_s18, 2  ;;  %p246_p1 = scmp.ne.s32.totalorder %s2995_s13, %s2991_s12 }
   0xc   : > { %p247_p2 = scmp.eq.s32.totalorder %s2716_s7, 1  ;;  %p252_p3 = scmp.ne.s32.totalorder %s2991_s12, %s2987_s11 }
   0xd   : > { %s4455_s18 = smov (%p42_p0, %s40_s18), 0  ;;  %p253_p5 = scmp.eq.s32.totalorder %s2717_s17, 1 }
   0xe   : > { %p3108_p4 = por %p247_p2, %p246_p1  ;;  %s231_s21 = ssub.s32 %s3003_s15, %s4455_s18 }
   0xf   : > { %p2720_p6 = scmp.ge.s32.totalorder %s3007_s16, 1  ;;  %p234_p7 = scmp.eq.s32.totalorder %s231_s21, 0 }
  0x10   : > { %p3115_p8 = por %p253_p5, %p252_p3  ;;  %p343_p9 = scmp.lt.s32.totalorder %s3007_s16, 3 }
  0x11   : > { %s3121_s23 = scalar_select %p234_p7, %s2995_s13, %s236_s19  }
  0x12   : > { %p344_p10 = pnand %p2720_p6, %p343_p9 }
  0x14   : > { %347 = sbr.rel (%p344_p10) target bundleno = 739 (0x2e3), region = 52 }
  0x19   : > { %v528_v1 = vld [vmem:[%s4410_s3 + $0x18] sm:$0xff]  ;;  %v527_v3 = vld [vmem:[%s4410_s3 + $0x10] sm:$0xff]  ;;  %p399_p11 = scmp.lt.s32.totalorder %s2999_s14, 1  ;;  %v3009_v4 = vmov 0.0   ;;  %v526_v6 = vld [vmem:[%s4410_s3 + $0x8] sm:$0xff]  ;;  %s4429_s0 = sld [smem:[#allocation16_spill]]  ;;  %v732_v32 = vlaneseq }
  0x1a   : > { %v426_v2 = vld [vmem:[%s4411_s4 + $0x18] sm:$0xff]  ;;  %2779 = vmatprep.subr.mxu0 %v3009_v4  ;;  %2822 = vmatprep.subr.mxu1 %v528_v1  ;;  %v425_v5 = vld [vmem:[%s4411_s4 + $0x10] sm:$0xff]  ;;  %v424_v7 = vld [vmem:[%s4411_s4 + $0x8] sm:$0xff]  ;;  %vm434_vm0 = vcmask 261120   ;;  %vm3010_vm1 = vmmov 0   ;;  %v3011_v18 = vmov 0  }
  0x1b   : > { %2780 = vmatpush3.msra.mxu0 %v426_v2  ;;  %2826 = vmatpush3.msra.mxu1 %v528_v1  ;;  %s3140_s19 = scalar_select %p399_p11, %s2999_s14, 1  ;;  %v525_v8 = vld [vmem:[%s4410_s3] sm:$0xff]  ;;  %v2745_v20 = vld [vmem:[#allocation3] ss:$0 sm:$0xff]  ;;  %v3012_v33 = vmov 1966171168  }
  0x1c   : > { %2781 = vmatprep.subr.mxu0 %v3009_v4  ;;  %2823 = vmatprep.subr.mxu1 %v527_v3  ;;  %v423_v9 = vld [vmem:[%s4411_s4] sm:$0xff]  ;;  %v730_v34 = vunpack.c.l.s4 %v3012_v33  ;;  %v3206_v39 = vshrl.u32 %v732_v32, 7  ;;  %vm1874_vm3 = vcmask 130112   ;;  %vm1881_vm4 = vcmask 195712   ;;  %s4305_s21 = sand.u32 1, %s2991_s12   ;;  %s3013_s7 = smov [#allocation4]  }
  0x1d   : > { %2782 = vmatpush3.msra.mxu0 %v425_v5  ;;  %2827 = vmatpush3.msra.mxu1 %v527_v3  ;;  %s2753_s27 = sshll.u32 %s3140_s19, 7  ;;  %s2725_s28 = sshll.u32 %s3140_s19, 3  ;;  %v2726_v31 = vld [vmem:[%s4412_s5] ss:$0 sm:$0xff]  ;;  %vm1888_vm5 = vcmask 261312   ;;  %vm1895_vm6 = vcmask 326912  }
  0x1e   : > { %2783 = vmatprep.subr.mxu0 %v3009_v4  ;;  %2824 = vmatprep.subr.mxu1 %v526_v6  ;;  %s411_s25 = scalar_lea.vmem %s4408_s1, %s2725_s28  ;;  %s417_s29 = scalar_lea.vmem %s4409_s2, %s3140_s19  ;;  %v731_v40 = vunpack.c.0.s8 %v730_v34  ;;  %v3224_v49 = vsub.s32 0, %v3206_v39  ;;  %v3258_v63 = vld [vmem:[%s4413_s6] ss:$0 sm:$0xff]  ;;  %vm1902_vm7 = vcmask 392512   ;;  %vm1909_vm8 = vcmask 458112  }
  0x1f   : > { %s3156_s17 = scalar_lea.vmem %s4429_s0, %s2753_s27  ;;  %2784 = vmatpush3.msra.mxu0 %v424_v7  ;;  %2828 = vmatpush3.msra.mxu1 %v526_v6  ;;  %v422_v11 = vld [vmem:[%s411_s25] sm:$0xff]  ;;  %vm1916_vm9 = vcmask 523712   ;;  %vm1923_vm10 = vcmask 589312   ;;  %vm1930_vm11 = vcmask 654912   ;;  %vm1937_vm12 = vcmask 720512   ;;  %s4425_s24 = sshll.u32 %s4305_s21, 3 }
  0x20   : > { %v515_v10 = vld [vmem:[%s3156_s17 + $0x30] sm:$0xff]  ;;  %2785 = vmatprep.subr.mxu0 %v3009_v4  ;;  %2825 = vmatprep.subr.mxu1 %v525_v8  ;;  %v516_v12 = vld [vmem:[%s3156_s17 + $0x38] sm:$0xff]  ;;  %v517_v13 = vld [vmem:[%s3156_s17 + $0x40] sm:$0xff]  ;;  %v3212_v42 = vsub.s32 %v731_v40, %v3206_v39  ;;  %4432 = vst [vmem:[#allocation12_spill] sm:$0xff] %v3224_v49  ;;  %vm4423_vm13 = vcmask 786112   ;;  %vm1951_vm14 = vcmask 851712  }
  0x21   : > { %2786 = vmatpush3.msra.mxu0 %v423_v9  ;;  %2787 = vmatprep.mubr.msk.f32.mxu0 %vm3010_vm1, %v3009_v4  ;;  %v509_v14 = vld [vmem:[%s3156_s17] sm:$0xff]  ;;  %v518_v16 = vld [vmem:[%s3156_s17 + $0x48] sm:$0xff]  ;;  %v519_v17 = vld [vmem:[%s3156_s17 + $0x50] sm:$0xff]  ;;  %vm1958_vm15 = vcmask 917312   ;;  %vm1965_vm1 = vcmask 982912   ;;  %s4424_s25 = sshll.u32 %s2999_s14, 7 }
  0x22   : > { %2829 = vmatpush3.msra.mxu1 %v525_v8  ;;  %2807 = vmatprep.mubr.msk.f32.mxu1 %vm434_vm0, %v515_v10  ;;  %v725_v15 = vld [vmem:[%s417_s29] sm:$0x1]  ;;  %v510_v21 = vld [vmem:[%s3156_s17 + $0x8] sm:$0xff]  ;;  %v520_v22 = vld [vmem:[%s3156_s17 + $0x58] sm:$0xff]  ;;  %s390_s26 = scalar_lea.vmem [#allocation4], %s4425_s24  ;;  %s4334_s28 = scalar_lea.hbm %s4415_s8, %s4424_s25 }
  0x23   : > { %2788 = vmatmul.mubr.msk.f32.vlgmr.msra.gmra.mxu0 %vm434_vm0, %v422_v11  ;;  %2790 = vmatprep.subr.mxu0 %v528_v1  ;;  %vm1728_vm2 = vcmp.gt.f32.partialorder %v725_v15, 0.5  ;;  %v511_v23 = vld [vmem:[%s3156_s17 + $0x10] sm:$0xff]  ;;  %v521_v24 = vld [vmem:[%s3156_s17 + $0x60] sm:$0xff]  ;;  %v512_v25 = vld [vmem:[%s3156_s17 + $0x18] sm:$0xff]  ;;  %s2571_s27 = sshll.u32 %s390_s26, 4  ;;  %s2552_s30 = scalar_lea.sflag [#allocation5], %s4305_s21  ;;  %s4336_s27 = int_to_ptr.vmem [resolvable:$true] %s2571_s27 }
  0x24   : > { %2808 = vmatmul.mubr.msk.f32.vlgmr.msra.gmra.mxu1 %vm434_vm0, %v516_v12  ;;  %2791 = vmatpush3.msra.mxu0 %v528_v1  ;;  %v3176_v19 = vsel %vm1728_vm2, 1, %v3011_v18  ;;  %v522_v26 = vld [vmem:[%s3156_s17 + $0x68] sm:$0xff]  ;;  %v513_v27 = vld [vmem:[%s3156_s17 + $0x20] sm:$0xff]  ;;  %v523_v28 = vld [vmem:[%s3156_s17 + $0x70] sm:$0xff]  ;;  %vm1972_vm2 = vcmask 1048512   ;;  %s2901_s10 = scalar_lea.vmem %s4336_s27, 128 }
  0x25   : > { %2792 = vmatprep.subr.mxu0 %v527_v3  ;;  %2810 = vmatprep.mubr.msk.f32.mxu1 %vm434_vm0, %v517_v13  ;;  %4430 = vst [vmem:[#allocation10_spill] sm:$0xff] %v3176_v19  ;;  %v514_v29 = vld [vmem:[%s3156_s17 + $0x28] sm:$0xff]  ;;  %v524_v30 = vld [vmem:[%s3156_s17 + $0x78] sm:$0xff]  ;;  %p2902_p12 = scmp.ne.s32.totalorder %s4336_s27, %s2901_s10  ;;  %s2905_s17 = sshll.u32 %s3013_s7, 4  ;;  %s2906_s17 = int_to_ptr.vmem [resolvable:$false] %s2905_s17 }
  0x26   : > { %2793 = vmatpush3.msra.mxu0 %v527_v3  ;;  %2798 = vmatprep.mubr.msk.f32.mxu0 %vm434_vm0, %v509_v14  ;;  %s2907_s29 = scalar_lea.vmem %s2906_s17, 256  ;;  %p2908_p1 = scmp.lt.s32.totalorder %s4336_s27, %s2906_s17 }
  0x27   : > { %2794 = vmatprep.subr.mxu0 %v526_v6  ;;  %2894 = vset.pattern.permute.xlu0 %v3011_v18  ;;  %p2903_p13 = pnand %p2902_p12, %p3108_p4  ;;  %p2909_p2 = scmp.lt.s32.totalorder %s2907_s29, %s2901_s10 }
  0x28   : > { %2811 = vmatmul.mubr.msk.f32.gmra.mxu1 %vm434_vm0, %v518_v16  ;;  %2795 = vmatpush3.msra.mxu0 %v526_v6 }
  0x29   : > { %2796 = vmatprep.subr.mxu0 %v525_v8  ;;  %2813 = vmatprep.mubr.msk.f32.mxu1 %vm434_vm0, %v519_v17  ;;  %p2904_p0 = pneg %p2903_p13  ;;  %p2910_p3 = por %p2909_p2, %p2908_p1 }
  0x2a   : > { %2797 = vmatpush3.msra.mxu0 %v525_v8  ;;  %1597 = vperm.xlu0 %2894, %v2745_v20  }
  0x2b   : > { %2799 = vmatmul.mubr.msk.f32.vlgmr.msra.gmra.mxu0 %vm434_vm0, %v510_v21  ;;  %p2911_p5 = pnand %p2910_p3, %p2904_p0 }
  0x2c   : > { %2814 = vmatmul.mubr.msk.f32.gmra.mxu1 %vm434_vm0, %v520_v22  ;;  %2801 = vmatprep.mubr.msk.f32.mxu0 %vm434_vm0, %v511_v23 }
  0x2d   : > { %2816 = vmatprep.mubr.msk.f32.mxu1 %vm434_vm0, %v521_v24 }
  0x2f   : > { %2802 = vmatmul.mubr.msk.f32.gmra.mxu0 %vm434_vm0, %v512_v25 }
  0x30   : > { %2817 = vmatmul.mubr.msk.f32.gmra.mxu1 %vm434_vm0, %v522_v26  ;;  %2804 = vmatprep.mubr.msk.f32.mxu0 %vm434_vm0, %v513_v27 }
  0x31   : > { %2819 = vmatprep.mubr.msk.f32.mxu1 %vm434_vm0, %v523_v28 }
  0x33   : > { %2805 = vmatmul.mubr.msk.f32.gmra.mxu0 %vm434_vm0, %v514_v29 }
  0x34   : > { %2820 = vmatmul.mubr.msk.f32.gmra.mxu1 %vm434_vm0, %v524_v30 }
  0xe3   : > { %v504_v35 = vpop.f32.mrf.mxu0 }
  0xe4   : > { %v505_v36 = vadd.f32 %v2726_v31, %v504_v35  ;;  %v3203_v37 = vpop.f32.mrf.mxu1 }
  0xe5   : > { %v2789_v38 = vpop.f32.mrf.mxu0 }
  0xe6   : > { %508 = vst.msk [vmem:[#allocation2] sm:$0xff] %vm434_vm0, %v505_v36  ;;  %v3209_v41 = vpop.f32.mrf.mxu1 }
  0xe8   : > { %v3214_v43 = vpop.f32.mrf.mxu1 }
  0xe9   : > { %4431 = vst [vmem:[#allocation11_spill] sm:$0xff] %v3214_v43 }
  0xea   : > { %v3226_v50 = vpop.f32.mrf.mxu1 }
  0xeb   : > { %v3216_v44 = vpop.f32.mrf.mxu0 }
  0xec   : > { %v3244_v58 = vpop.f32.mrf.mxu1 }
  0xed   : > { %v726_v45 = vld [vmem:[#allocation2] sm:$0xff]  ;;  %v3218_v46 = vpop.f32.mrf.mxu0 }
  0xee   : > { %v728_v47 = vcombine.high %v726_v45, %v726_v45  ;;  %v3221_v48 = vrot.slane %v726_v45, %v3212_v42  ;;  %v3260_v0 = vpop.f32.mrf.mxu1 }
  0xef   : > { %v3228_v51 = vpop.f32.mrf.mxu0 }
  0xf0   : > { %4433 = vst [vmem:[#allocation13_spill] sm:$0xff] %v3228_v51  ;;  %v742_v52 = vrot.slane %v728_v47, %v3212_v42  ;;  %v3233_v53 = vrot.slane %v3221_v48, %v3212_v42  ;;  %v3276_v15 = vpop.f32.mrf.mxu1  ;;  %v743_v30 = vcombine.high %v3221_v48, %v3221_v48 }
  0xf1   : > { %v3235_v54 = vpop.f32.mrf.mxu0 }
  0xf2   : > { %v744_v55 = vcombine.high %v742_v52, %v742_v52  ;;  %v3238_v56 = vrot.slane %v742_v52, %v3212_v42  ;;  %v3242_v57 = vrot.slane %v3233_v53, %v3224_v49  ;;  %v3284_v25 = vpop.f32.mrf.mxu1  ;;  %v3307_v52 = vrot.slane %v743_v30, %v3212_v42 }
  0xf3   : > { %v3249_v60 = vpop.f32.mrf.mxu0 }
  0xf4   : > { %v3247_v59 = vrot.slane %v744_v55, %v3212_v42  ;;  %4434 = vst [vmem:[#allocation14_spill] sm:$0xff] %v3249_v60  ;;  %v817_v61 = vadd.f32 %v3242_v57, %v3218_v46  ;;  %v819_v62 = vadd.f32 %v3242_v57, %v3235_v54  ;;  %v818_v3 = vadd.f32 %v3216_v44, %v3242_v57  ;;  %v3298_v36 = vpop.f32.mrf.mxu1 }
  0xf5   : > { %v820_v4 = vadd.f32 %v3228_v51, %v3242_v57  ;;  %v823_v5 = vadd.f32 %v3242_v57, %v3209_v41  ;;  %v822_v6 = vadd.f32 %v3249_v60, %v3242_v57  ;;  %v825_v13 = vadd.f32 %v3242_v57, %v3226_v50  ;;  %v3300_v38 = vpop.f32.mrf.mxu0 }
  0xf6   : > { %v945_v1 = vmax.f32 %v817_v61, 0.0  ;;  %v947_v2 = vmax.f32 %v819_v62, 0.0  ;;  %v946_v9 = vmax.f32 %v818_v3, 0.0  ;;  %v824_v14 = vadd.f32 %v3203_v37, %v3242_v57  ;;  %4435 = vst [vmem:[#allocation15_spill] sm:$0xff] %v3300_v38 }
  0xf7   : > { %v948_v10 = vmax.f32 %v820_v4, 0.0  ;;  %v951_v11 = vmax.f32 %v823_v5, 0.0  ;;  %v950_v12 = vmax.f32 %v822_v6, 0.0  ;;  %v953_v23 = vmax.f32 %v825_v13, 0.0 }
  0xf8   : > { %v1079_v7 = vmul.f32 %v3258_v63, %v945_v1  ;;  %v1081_v8 = vmul.f32 %v3258_v63, %v947_v2  ;;  %v1080_v18 = vmul.f32 %v3258_v63, %v946_v9  ;;  %v952_v24 = vmax.f32 %v824_v14, 0.0  ;;  %v3315_v2 = vpop.f32.mrf.mxu1 }
  0xf9   : > { %v1082_v20 = vmul.f32 %v3258_v63, %v948_v10  ;;  %v1085_v21 = vmul.f32 %v3258_v63, %v951_v11  ;;  %v1084_v22 = vmul.f32 %v3258_v63, %v950_v12  ;;  %v827_v28 = vadd.f32 %v3242_v57, %v3260_v0 }
  0xfa   : > { %v1207_v16 = vsel %vm434_vm0, %v1079_v7, 0.0  ;;  %v1213_v17 = vsel %vm434_vm0, %v1081_v8, 0.0  ;;  %v1210_v26 = vsel %vm434_vm0, %v1080_v18, 0.0  ;;  %v826_v29 = vadd.f32 %v3214_v43, %v3242_v57 }
  0xfb   : > { %1208 = vadd.xlane.f32.xlu0 %v1207_v16  ;;  %1214 = vadd.xlane.f32.xlu1 %v1213_v17  ;;  %v1216_v27 = vsel %vm434_vm0, %v1082_v20, 0.0  ;;  %v1225_v31 = vsel %vm434_vm0, %v1085_v21, 0.0  ;;  %v1222_v33 = vsel %vm434_vm0, %v1084_v22, 0.0  ;;  %v1087_v34 = vmul.f32 %v3258_v63, %v953_v23 }
  0xfc   : > { %v1086_v35 = vmul.f32 %v3258_v63, %v952_v24  ;;  %v955_v40 = vmax.f32 %v827_v28, 0.0  ;;  %v954_v45 = vmax.f32 %v826_v29, 0.0  ;;  %v829_v47 = vadd.f32 %v3242_v57, %v3284_v25 }
  0xfd   : > { %v828_v48 = vadd.f32 %v3244_v58, %v3242_v57  ;;  %v1231_v55 = vsel %vm434_vm0, %v1087_v34, 0.0  ;;  %v830_v62 = vadd.f32 %v3276_v15, %v3242_v57  ;;  %v821_v1 = vadd.f32 %v3242_v57, %v3300_v38 }
  0xfe   : > { %v1228_v61 = vsel %vm434_vm0, %v1086_v35, 0.0  ;;  %v1089_v3 = vmul.f32 %v3258_v63, %v955_v40  ;;  %v1088_v4 = vmul.f32 %v3258_v63, %v954_v45  ;;  %v957_v5 = vmax.f32 %v829_v47, 0.0 }
  0xff   : > { %1211 = vadd.xlane.f32.xlu0 %v1210_v26  ;;  %1217 = vadd.xlane.f32.xlu1 %v1216_v27  ;;  %v956_v6 = vmax.f32 %v828_v48, 0.0  ;;  %v3321_v42 = vrot.slane %v3307_v52, %v3224_v49  ;;  %v958_v7 = vmax.f32 %v830_v62, 0.0  ;;  %v949_v8 = vmax.f32 %v821_v1, 0.0 }
 0x100   : > { %v832_v9 = vadd.f32 %v3298_v36, %v3242_v57  ;;  %v831_v10 = vadd.f32 %v3242_v57, %v3315_v2  ;;  %v1237_v11 = vsel %vm434_vm0, %v1089_v3, 0.0  ;;  %v1234_v12 = vsel %vm434_vm0, %v1088_v4, 0.0 }
 0x101   : > { %v1091_v13 = vmul.f32 %v3258_v63, %v957_v5  ;;  %v1090_v14 = vmul.f32 %v3258_v63, %v956_v6  ;;  %v1092_v16 = vmul.f32 %v3258_v63, %v958_v7  ;;  %v1083_v17 = vmul.f32 %v3258_v63, %v949_v8 }
 0x102   : > { %v960_v18 = vmax.f32 %v832_v9, 0.0  ;;  %v959_v20 = vmax.f32 %v831_v10, 0.0  ;;  %v834_v22 = vadd.f32 %v3216_v44, %v3321_v42  ;;  %v833_v23 = vadd.f32 %v3321_v42, %v3218_v46 }
 0x103   : > { %1226 = vadd.xlane.f32.xlu0 %v1225_v31  ;;  %1223 = vadd.xlane.f32.xlu1 %v1222_v33  ;;  %v1243_v21 = vsel %vm434_vm0, %v1091_v13, 0.0  ;;  %v1240_v57 = vsel %vm434_vm0, %v1090_v14, 0.0  ;;  %v1246_v24 = vsel %vm434_vm0, %v1092_v16, 0.0  ;;  %v1219_v26 = vsel %vm434_vm0, %v1083_v17, 0.0 }
 0x104   : > { %v1094_v27 = vmul.f32 %v3258_v63, %v960_v18  ;;  %v1093_v28 = vmul.f32 %v3258_v63, %v959_v20  ;;  %v962_v29 = vmax.f32 %v834_v22, 0.0  ;;  %v961_v30 = vmax.f32 %v833_v23, 0.0 }
 0x105   : > { %v836_v31 = vadd.f32 %v3228_v51, %v3321_v42  ;;  %v835_v33 = vadd.f32 %v3321_v42, %v3235_v54  ;;  %v838_v40 = vadd.f32 %v3249_v60, %v3321_v42  ;;  %v837_v45 = vadd.f32 %v3321_v42, %v3300_v38 }
 0x106   : > { %v1252_v34 = vsel %vm434_vm0, %v1094_v27, 0.0  ;;  %v1249_v35 = vsel %vm434_vm0, %v1093_v28, 0.0  ;;  %v1096_v47 = vmul.f32 %v3258_v63, %v962_v29  ;;  %v1095_v48 = vmul.f32 %v3258_v63, %v961_v30 }
 0x107   : > { %1232 = vadd.xlane.f32.xlu0 %v1231_v55  ;;  %1229 = vadd.xlane.f32.xlu1 %v1228_v61  ;;  %v964_v55 = vmax.f32 %v836_v31, 0.0  ;;  %v963_v61 = vmax.f32 %v835_v33, 0.0  ;;  %v966_v62 = vmax.f32 %v838_v40, 0.0  ;;  %v965_v1 = vmax.f32 %v837_v45, 0.0 }
 0x108   : > { %v840_v3 = vadd.f32 %v3203_v37, %v3321_v42  ;;  %v839_v4 = vadd.f32 %v3321_v42, %v3209_v41  ;;  %v1258_v5 = vsel %vm434_vm0, %v1096_v47, 0.0  ;;  %v1255_v6 = vsel %vm434_vm0, %v1095_v48, 0.0 }
 0x109   : > { %v1098_v7 = vmul.f32 %v3258_v63, %v964_v55  ;;  %v1097_v8 = vmul.f32 %v3258_v63, %v963_v61  ;;  %v1100_v9 = vmul.f32 %v3258_v63, %v966_v62  ;;  %v1099_v10 = vmul.f32 %v3258_v63, %v965_v1 }
 0x10a   : > { %v842_v16 = vadd.f32 %v3214_v43, %v3321_v42  ;;  %v841_v17 = vadd.f32 %v3321_v42, %v3226_v50  ;;  %v773_v27 = vcombine.high %v3233_v53, %v3233_v53  ;;  %v846_v30 = vadd.f32 %v3276_v15, %v3321_v42 }
 0x10b   : > { %1238 = vadd.xlane.f32.xlu0 %v1237_v11  ;;  %1235 = vadd.xlane.f32.xlu1 %v1234_v12  ;;  %v968_v11 = vmax.f32 %v840_v3, 0.0  ;;  %v967_v12 = vmax.f32 %v839_v4, 0.0  ;;  %v1264_v13 = vsel %vm434_vm0, %v1098_v7, 0.0  ;;  %v1261_v14 = vsel %vm434_vm0, %v1097_v8, 0.0 }
 0x10c   : > { %v1270_v18 = vsel %vm434_vm0, %v1100_v9, 0.0  ;;  %v1267_v20 = vsel %vm434_vm0, %v1099_v10, 0.0  ;;  %v970_v22 = vmax.f32 %v842_v16, 0.0  ;;  %v969_v23 = vmax.f32 %v841_v17, 0.0 }
 0x10d   : > { %v845_v31 = vadd.f32 %v3321_v42, %v3284_v25  ;;  %v3390_v53 = vrot.slane %v773_v27, %v3224_v49  ;;  %v974_v45 = vmax.f32 %v846_v30, 0.0  ;;  %v848_v48 = vadd.f32 %v3298_v36, %v3321_v42 }
 0x10e   : > { %v1104_v33 = vmul.f32 %v3258_v63, %v970_v22  ;;  %v847_v55 = vadd.f32 %v3321_v42, %v3315_v2 }
 0x10f   : > { %1244 = vadd.xlane.f32.xlu0 %v1243_v21  ;;  %1241 = vadd.xlane.f32.xlu1 %v1240_v57  ;;  %v1102_v21 = vmul.f32 %v3258_v63, %v968_v11  ;;  %v1101_v57 = vmul.f32 %v3258_v63, %v967_v12  ;;  %v973_v47 = vmax.f32 %v845_v31, 0.0  ;;  %v1108_v4 = vmul.f32 %v3258_v63, %v974_v45 }
 0x110   : > { %v1282_v61 = vsel %vm434_vm0, %v1104_v33, 0.0  ;;  %v975_v7 = vmax.f32 %v847_v55, 0.0  ;;  %v850_v9 = vadd.f32 %v3216_v44, %v3390_v53  ;;  %v849_v10 = vadd.f32 %v3390_v53, %v3218_v46 }
 0x111   : > { %v1276_v28 = vsel %vm434_vm0, %v1102_v21, 0.0  ;;  %v1273_v29 = vsel %vm434_vm0, %v1101_v57, 0.0  ;;  %v1294_v11 = vsel %vm434_vm0, %v1108_v4, 0.0  ;;  %v854_v22 = vadd.f32 %v3249_v60, %v3390_v53 }
 0x112   : > { %v978_v16 = vmax.f32 %v850_v9, 0.0  ;;  %v977_v17 = vmax.f32 %v849_v10, 0.0  ;;  %v856_v31 = vadd.f32 %v3203_v37, %v3390_v53  ;;  %v855_v33 = vadd.f32 %v3390_v53, %v3209_v41 }
 0x113   : > { %1247 = vadd.xlane.f32.xlu1 %v1246_v24  ;;  %1220 = vadd.xlane.f32.xlu0 %v1219_v26  ;;  %v844_v24 = vadd.f32 %v3244_v58, %v3321_v42  ;;  %v843_v26 = vadd.f32 %v3321_v42, %v3260_v0  ;;  %v857_v4 = vadd.f32 %v3390_v53, %v3226_v50 }
 0x114   : > { %v984_v55 = vmax.f32 %v856_v31, 0.0  ;;  %v860_v10 = vadd.f32 %v3244_v58, %v3390_v53 }
 0x115   : > { %v971_v40 = vmax.f32 %v843_v26, 0.0  ;;  %v1111_v26 = vmul.f32 %v3258_v63, %v977_v17  ;;  %v985_v9 = vmax.f32 %v857_v4, 0.0 }
 0x117   : > { %1253 = vadd.xlane.f32.xlu1 %v1252_v34  ;;  %1250 = vadd.xlane.f32.xlu0 %v1249_v35  ;;  %v1103_v34 = vmul.f32 %v3258_v63, %v969_v23  ;;  %v972_v35 = vmax.f32 %v844_v24, 0.0  ;;  %v1105_v3 = vmul.f32 %v3258_v63, %v971_v40  ;;  %v853_v23 = vadd.f32 %v3390_v53, %v3300_v38 }
 0x118   : > { %v1112_v24 = vmul.f32 %v3258_v63, %v978_v16  ;;  %v861_v16 = vadd.f32 %v3390_v53, %v3284_v25 }
 0x119   : > { %v1279_v62 = vsel %vm434_vm0, %v1103_v34, 0.0  ;;  %v1106_v1 = vmul.f32 %v3258_v63, %v972_v35  ;;  %v1285_v42 = vsel %vm434_vm0, %v1105_v3, 0.0  ;;  %v981_v30 = vmax.f32 %v853_v23, 0.0 }
 0x11a   : > { %v1306_v34 = vsel %vm434_vm0, %v1112_v24, 0.0  ;;  %v1303_v35 = vsel %vm434_vm0, %v1111_v26, 0.0  ;;  %v858_v3 = vadd.f32 %v3214_v43, %v3390_v53  ;;  %v989_v23 = vmax.f32 %v861_v16, 0.0 }
 0x11b   : > { %1259 = vadd.xlane.f32.xlu1 %v1258_v5  ;;  %1256 = vadd.xlane.f32.xlu0 %v1255_v6  ;;  %v1107_v5 = vmul.f32 %v3258_v63, %v973_v47  ;;  %v976_v6 = vmax.f32 %v848_v48, 0.0  ;;  %v1288_v8 = vsel %vm434_vm0, %v1106_v1, 0.0  ;;  %v1115_v48 = vmul.f32 %v3258_v63, %v981_v30 }
 0x11c   : > { %v864_v24 = vadd.f32 %v3298_v36, %v3390_v53  ;;  %v863_v26 = vadd.f32 %v3390_v53, %v3315_v2 }
 0x11d   : > { %v1291_v12 = vsel %vm434_vm0, %v1107_v5, 0.0 }
 0x11f   : > { %1265 = vadd.xlane.f32.xlu1 %v1264_v13  ;;  %1262 = vadd.xlane.f32.xlu0 %v1261_v14  ;;  %v1110_v13 = vmul.f32 %v3258_v63, %v976_v6  ;;  %v1109_v14 = vmul.f32 %v3258_v63, %v975_v7  ;;  %v1315_v6 = vsel %vm434_vm0, %v1115_v48, 0.0  ;;  %v1118_v7 = vmul.f32 %v3258_v63, %v984_v55 }
 0x121   : > { %v1300_v21 = vsel %vm434_vm0, %v1110_v13, 0.0  ;;  %v1297_v57 = vsel %vm434_vm0, %v1109_v14, 0.0  ;;  %v862_v14 = vadd.f32 %v3276_v15, %v3390_v53 }
 0x123   : > { %1271 = vadd.xlane.f32.xlu1 %v1270_v18  ;;  %1268 = vadd.xlane.f32.xlu0 %v1267_v20  ;;  %v852_v18 = vadd.f32 %v3228_v51, %v3390_v53  ;;  %v851_v20 = vadd.f32 %v3390_v53, %v3235_v54 }
 0x125   : > { %v980_v27 = vmax.f32 %v852_v18, 0.0  ;;  %v1119_v18 = vmul.f32 %v3258_v63, %v985_v9 }
 0x127   : > { %1277 = vadd.xlane.f32.xlu1 %v1276_v28  ;;  %1274 = vadd.xlane.f32.xlu0 %v1273_v29  ;;  %v979_v28 = vmax.f32 %v851_v20, 0.0  ;;  %v982_v29 = vmax.f32 %v854_v22, 0.0  ;;  %v1114_v40 = vmul.f32 %v3258_v63, %v980_v27  ;;  %v988_v20 = vmax.f32 %v860_v10, 0.0 }
 0x128   : > { %v990_v22 = vmax.f32 %v862_v14, 0.0 }
 0x129   : > { %v1113_v45 = vmul.f32 %v3258_v63, %v979_v28  ;;  %v1116_v47 = vmul.f32 %v3258_v63, %v982_v29  ;;  %v1327_v28 = vsel %vm434_vm0, %v1119_v18, 0.0  ;;  %v1122_v29 = vmul.f32 %v3258_v63, %v988_v20 }
 0x12a   : > { %v1124_v31 = vmul.f32 %v3258_v63, %v990_v22 }
 0x12b   : > { %1283 = vadd.xlane.f32.xlu1 %v1282_v61  ;;  %1280 = vadd.xlane.f32.xlu0 %v1279_v62  ;;  %v983_v61 = vmax.f32 %v855_v33, 0.0  ;;  %v1312_v62 = vsel %vm434_vm0, %v1114_v40, 0.0  ;;  %v1309_v1 = vsel %vm434_vm0, %v1113_v45, 0.0  ;;  %v1318_v5 = vsel %vm434_vm0, %v1116_v47, 0.0 }
 0x12c   : > { %v1123_v33 = vmul.f32 %v3258_v63, %v989_v23  ;;  %v1336_v40 = vsel %vm434_vm0, %v1122_v29, 0.0  ;;  %v1342_v48 = vsel %vm434_vm0, %v1124_v31, 0.0  ;;  %v775_v23 = vcombine.high %v3307_v52, %v3307_v52 }
 0x12e   : > { %v1339_v55 = vsel %vm434_vm0, %v1123_v33, 0.0  ;;  %v3511_v52 = vrot.slane %v775_v23, %v3224_v49 }
 0x12f   : > { %1289 = vadd.xlane.f32.xlu1 %v1288_v8  ;;  %1286 = vadd.xlane.f32.xlu0 %v1285_v42  ;;  %v1117_v8 = vmul.f32 %v3258_v63, %v983_v61  ;;  %v986_v42 = vmax.f32 %v858_v3, 0.0 }
 0x131   : > { %v1321_v13 = vsel %vm434_vm0, %v1117_v8, 0.0  ;;  %v1120_v17 = vmul.f32 %v3258_v63, %v986_v42 }
 0x133   : > { %1295 = vadd.xlane.f32.xlu1 %v1294_v11  ;;  %1292 = vadd.xlane.f32.xlu0 %v1291_v12  ;;  %v859_v11 = vadd.f32 %v3390_v53, %v3260_v0  ;;  %v1324_v12 = vsel %vm434_vm0, %v1118_v7, 0.0  ;;  %v1330_v27 = vsel %vm434_vm0, %v1120_v17, 0.0 }
 0x137   : > { %1301 = vadd.xlane.f32.xlu1 %v1300_v21  ;;  %1298 = vadd.xlane.f32.xlu0 %v1297_v57  ;;  %v987_v21 = vmax.f32 %v859_v11, 0.0  ;;  %v3458_v57 = vrot.slane %v3238_v56, %v3224_v49 }
 0x139   : > { %v1121_v30 = vmul.f32 %v3258_v63, %v987_v21  ;;  %v882_v45 = vadd.f32 %v3216_v44, %v3458_v57  ;;  %v881_v47 = vadd.f32 %v3458_v57, %v3218_v46  ;;  %v884_v4 = vadd.f32 %v3228_v51, %v3458_v57 }
 0x13a   : > { %v886_v8 = vadd.f32 %v3249_v60, %v3458_v57  ;;  %v885_v42 = vadd.f32 %v3458_v57, %v3300_v38  ;;  %v888_v16 = vadd.f32 %v3203_v37, %v3458_v57  ;;  %v887_v17 = vadd.f32 %v3458_v57, %v3209_v41 }
 0x13b   : > { %1307 = vadd.xlane.f32.xlu1 %v1306_v34  ;;  %1304 = vadd.xlane.f32.xlu0 %v1303_v35  ;;  %v992_v34 = vmax.f32 %v864_v24, 0.0  ;;  %v991_v35 = vmax.f32 %v863_v26, 0.0  ;;  %v1333_v53 = vsel %vm434_vm0, %v1121_v30, 0.0  ;;  %v1009_v3 = vmax.f32 %v881_v47, 0.0 }
 0x13c   : > { %v1012_v11 = vmax.f32 %v884_v4, 0.0  ;;  %v1013_v14 = vmax.f32 %v885_v42, 0.0  ;;  %v890_v31 = vadd.f32 %v3214_v43, %v3458_v57  ;;  %v889_v33 = vadd.f32 %v3458_v57, %v3226_v50 }
 0x13d   : > { %v1126_v61 = vmul.f32 %v3258_v63, %v992_v34  ;;  %v1143_v10 = vmul.f32 %v3258_v63, %v1009_v3  ;;  %v865_v3 = vadd.f32 %v3511_v52, %v3218_v46 }
 0x13e   : > { %v1146_v21 = vmul.f32 %v3258_v63, %v1012_v11  ;;  %v1147_v26 = vmul.f32 %v3258_v63, %v1013_v14  ;;  %v1017_v47 = vmax.f32 %v889_v33, 0.0  ;;  %v872_v33 = vadd.f32 %v3203_v37, %v3511_v52 }
 0x13f   : > { %1313 = vadd.xlane.f32.xlu1 %v1312_v62  ;;  %1310 = vadd.xlane.f32.xlu0 %v1309_v1  ;;  %v1125_v62 = vmul.f32 %v3258_v63, %v991_v35  ;;  %v1010_v1 = vmax.f32 %v882_v45, 0.0  ;;  %v1399_v20 = vsel %vm434_vm0, %v1143_v10, 0.0  ;;  %v1018_v45 = vmax.f32 %v890_v31, 0.0 }
 0x140   : > { %v1408_v29 = vsel %vm434_vm0, %v1146_v21, 0.0  ;;  %v1411_v35 = vsel %vm434_vm0, %v1147_v26, 0.0  ;;  %v993_v42 = vmax.f32 %v865_v3, 0.0  ;;  %v867_v10 = vadd.f32 %v3511_v52, %v3235_v54 }
 0x141   : > { %v1345_v7 = vsel %vm434_vm0, %v1125_v62, 0.0  ;;  %v1144_v9 = vmul.f32 %v3258_v63, %v1010_v1  ;;  %v866_v1 = vadd.f32 %v3216_v44, %v3511_v52  ;;  %v1152_v4 = vmul.f32 %v3258_v63, %v1018_v45 }
 0x142   : > { %v995_v23 = vmax.f32 %v867_v10, 0.0  ;;  %v873_v45 = vadd.f32 %v3511_v52, %v3226_v50  ;;  %v878_v10 = vadd.f32 %v3276_v15, %v3511_v52 }
 0x143   : > { %1319 = vadd.xlane.f32.xlu1 %v1318_v5  ;;  %1316 = vadd.xlane.f32.xlu0 %v1315_v6  ;;  %v883_v5 = vadd.f32 %v3458_v57, %v3235_v54  ;;  %v1348_v6 = vsel %vm434_vm0, %v1126_v61, 0.0  ;;  %v1402_v18 = vsel %vm434_vm0, %v1144_v9, 0.0  ;;  %v868_v9 = vadd.f32 %v3228_v51, %v3511_v52 }
 0x144   : > { %v1426_v11 = vsel %vm434_vm0, %v1152_v4, 0.0  ;;  %v1001_v4 = vmax.f32 %v873_v45, 0.0 }
 0x147   : > { %1325 = vadd.xlane.f32.xlu1 %v1324_v12  ;;  %1322 = vadd.xlane.f32.xlu0 %v1321_v13  ;;  %v1011_v12 = vmax.f32 %v883_v5, 0.0  ;;  %v1014_v13 = vmax.f32 %v886_v8, 0.0  ;;  %v1151_v5 = vmul.f32 %v3258_v63, %v1017_v47  ;;  %v994_v8 = vmax.f32 %v866_v1, 0.0 }
 0x149   : > { %v1145_v22 = vmul.f32 %v3258_v63, %v1011_v12  ;;  %v1148_v24 = vmul.f32 %v3258_v63, %v1014_v13  ;;  %v1423_v12 = vsel %vm434_vm0, %v1151_v5, 0.0  ;;  %v876_v5 = vadd.f32 %v3244_v58, %v3511_v52 }
 0x14b   : > { %1331 = vadd.xlane.f32.xlu1 %v1330_v27  ;;  %1328 = vadd.xlane.f32.xlu0 %v1327_v28  ;;  %v1016_v27 = vmax.f32 %v888_v16, 0.0  ;;  %v1015_v28 = vmax.f32 %v887_v17, 0.0  ;;  %v1405_v30 = vsel %vm434_vm0, %v1145_v22, 0.0  ;;  %v1414_v34 = vsel %vm434_vm0, %v1148_v24, 0.0 }
 0x14c   : > { %v1128_v16 = vmul.f32 %v3258_v63, %v994_v8  ;;  %v1127_v17 = vmul.f32 %v3258_v63, %v993_v42  ;;  %v869_v24 = vadd.f32 %v3511_v52, %v3300_v38  ;;  %v875_v42 = vadd.f32 %v3511_v52, %v3260_v0 }
 0x14e   : > { %v1354_v26 = vsel %vm434_vm0, %v1128_v16, 0.0  ;;  %v997_v31 = vmax.f32 %v869_v24, 0.0  ;;  %v1004_v16 = vmax.f32 %v876_v5, 0.0  ;;  %v1006_v24 = vmax.f32 %v878_v10, 0.0 }
 0x14f   : > { %1337 = vadd.xlane.f32.xlu1 %v1336_v40  ;;  %1334 = vadd.xlane.f32.xlu0 %v1333_v53  ;;  %v1150_v40 = vmul.f32 %v3258_v63, %v1016_v27  ;;  %v1149_v53 = vmul.f32 %v3258_v63, %v1015_v28  ;;  %v1351_v27 = vsel %vm434_vm0, %v1127_v17, 0.0 }
 0x151   : > { %v1420_v61 = vsel %vm434_vm0, %v1150_v40, 0.0  ;;  %v1417_v62 = vsel %vm434_vm0, %v1149_v53, 0.0  ;;  %v874_v53 = vadd.f32 %v3214_v43, %v3511_v52 }
 0x153   : > { %1343 = vadd.xlane.f32.xlu1 %v1342_v48  ;;  %1340 = vadd.xlane.f32.xlu0 %v1339_v55  ;;  %v892_v48 = vadd.f32 %v3244_v58, %v3458_v57  ;;  %v891_v55 = vadd.f32 %v3458_v57, %v3260_v0  ;;  %v1002_v3 = vmax.f32 %v874_v53, 0.0 }
 0x157   : > { %1349 = vadd.xlane.f32.xlu1 %v1348_v6  ;;  %1346 = vadd.xlane.f32.xlu0 %v1345_v7  ;;  %v1020_v6 = vmax.f32 %v892_v48, 0.0  ;;  %v1019_v7 = vmax.f32 %v891_v55, 0.0  ;;  %v1131_v48 = vmul.f32 %v3258_v63, %v997_v31  ;;  %v1000_v55 = vmax.f32 %v872_v33, 0.0 }
 0x158   : > { %v1138_v33 = vmul.f32 %v3258_v63, %v1004_v16 }
 0x159   : > { %v1154_v13 = vmul.f32 %v3258_v63, %v1020_v6  ;;  %v1153_v14 = vmul.f32 %v3258_v63, %v1019_v7  ;;  %v1363_v6 = vsel %vm434_vm0, %v1131_v48, 0.0  ;;  %v1134_v7 = vmul.f32 %v3258_v63, %v1000_v55 }
 0x15a   : > { %v1384_v5 = vsel %vm434_vm0, %v1138_v33, 0.0 }
 0x15b   : > { %1403 = vadd.xlane.f32.xlu1 %v1402_v18  ;;  %1400 = vadd.xlane.f32.xlu0 %v1399_v20  ;;  %v996_v18 = vmax.f32 %v868_v9, 0.0  ;;  %v870_v20 = vadd.f32 %v3249_v60, %v3511_v52  ;;  %v1432_v21 = vsel %vm434_vm0, %v1154_v13, 0.0  ;;  %v1429_v22 = vsel %vm434_vm0, %v1153_v14, 0.0 }
 0x15c   : > { %v776_v9 = vcombine.high %v3247_v59, %v3247_v59  ;;  %v1136_v13 = vmul.f32 %v3258_v63, %v1002_v3  ;;  %v1135_v14 = vmul.f32 %v3258_v63, %v1001_v4  ;;  %v1372_v17 = vsel %vm434_vm0, %v1134_v7, 0.0 }
 0x15d   : > { %v1130_v28 = vmul.f32 %v3258_v63, %v996_v18 }
 0x15e   : > { %v1378_v31 = vsel %vm434_vm0, %v1136_v13, 0.0 }
 0x15f   : > { %1409 = vadd.xlane.f32.xlu1 %v1408_v29  ;;  %1406 = vadd.xlane.f32.xlu0 %v1405_v30  ;;  %v998_v29 = vmax.f32 %v870_v20, 0.0  ;;  %v1129_v30 = vmul.f32 %v3258_v63, %v995_v23  ;;  %v3589_v20 = vpop.permute.xlu0 %1597  ;;  %v3596_v23 = vrot.slane %v776_v9, %v3224_v49 }
 0x161   : > { %v1132_v40 = vmul.f32 %v3258_v63, %v998_v29  ;;  %v1357_v47 = vsel %vm434_vm0, %v1129_v30, 0.0  ;;  %v879_v30 = vadd.f32 %v3511_v52, %v3315_v2 }
 0x163   : > { %1415 = vadd.xlane.f32.xlu1 %v1414_v34  ;;  %1412 = vadd.xlane.f32.xlu0 %v1411_v35  ;;  %v871_v34 = vadd.f32 %v3511_v52, %v3209_v41  ;;  %v1360_v35 = vsel %vm434_vm0, %v1130_v28, 0.0  ;;  %v1366_v1 = vsel %vm434_vm0, %v1132_v40, 0.0  ;;  %v1375_v40 = vsel %vm434_vm0, %v1135_v14, 0.0 }
 0x164   : > { %v1007_v3 = vmax.f32 %v879_v30, 0.0 }
 0x167   : > { %1421 = vadd.xlane.f32.xlu1 %v1420_v61  ;;  %1418 = vadd.xlane.f32.xlu0 %v1417_v62  ;;  %v999_v61 = vmax.f32 %v871_v34, 0.0  ;;  %v3562_v62 = vand.u32 127, %v732_v32  ;;  %v774_v32 = vcombine.high %v3238_v56, %v3238_v56  ;;  %v877_v56 = vadd.f32 %v3511_v52, %v3284_v25 }
 0x169   : > { %v1133_v8 = vmul.f32 %v3258_v63, %v999_v61  ;;  %v1883_v29 = vadd.s32 4294967272, %v3562_v62  ;;  %v1005_v34 = vmax.f32 %v877_v56, 0.0  ;;  %v1918_v9 = vadd.s32 4294967232, %v3562_v62 }
 0x16a   : > { %v1911_v10 = vadd.s32 4294967240, %v3562_v62 }
 0x16b   : > { %1427 = vadd.xlane.f32.xlu1 %v1426_v11  ;;  %1424 = vadd.xlane.f32.xlu0 %v1423_v12  ;;  %v3580_v11 = vrot.slane %v3247_v59, %v3224_v49  ;;  %v1876_v12 = vadd.s32 4294967280, %v3562_v62  ;;  %v1369_v18 = vsel %vm434_vm0, %v1133_v8, 0.0  ;;  %v1869_v59 = vadd.s32 4294967288, %v3562_v62 }
 0x16c   : > { %v3651_v33 = vsub.s32 %v1918_v9, %v3206_v39 }
 0x16d   : > { %v3605_v28 = vsub.s32 %v1876_v12, %v3206_v39  ;;  %v3616_v45 = vsub.s32 %v1869_v59, %v3206_v39  ;;  %v898_v4 = vadd.f32 %v3216_v44, %v3580_v11  ;;  %v897_v8 = vadd.f32 %v3580_v11, %v3218_v46 }
 0x16f   : > { %1433 = vadd.xlane.f32.xlu1 %v1432_v21  ;;  %1430 = vadd.xlane.f32.xlu0 %v1429_v22  ;;  %v1003_v21 = vmax.f32 %v875_v42, 0.0  ;;  %v3593_v22 = vrot.slane %v774_v32, %v3224_v49  ;;  %v1026_v59 = vmax.f32 %v898_v4, 0.0 }
 0x171   : > { %v1137_v53 = vmul.f32 %v3258_v63, %v1003_v21  ;;  %v913_v16 = vadd.f32 %v3593_v22, %v3218_v46  ;;  %v1141_v21 = vmul.f32 %v3258_v63, %v1007_v3 }
 0x173   : > { %1355 = vadd.xlane.f32.xlu1 %v1354_v26  ;;  %1352 = vadd.xlane.f32.xlu0 %v1351_v27  ;;  %v880_v26 = vadd.f32 %v3298_v36, %v3511_v52  ;;  %v3602_v27 = vsub.s32 %v3562_v62, %v3206_v39  ;;  %v1140_v52 = vmul.f32 %v3258_v63, %v1006_v24  ;;  %v1381_v42 = vsel %vm434_vm0, %v1137_v53, 0.0 }
 0x174   : > { %v899_v24 = vadd.f32 %v3580_v11, %v3235_v54  ;;  %v1393_v4 = vsel %vm434_vm0, %v1141_v21, 0.0  ;;  %v1939_v21 = vadd.s32 4294967208, %v3562_v62 }
 0x175   : > { %v1008_v48 = vmax.f32 %v880_v26, 0.0  ;;  %v1390_v13 = vsel %vm434_vm0, %v1140_v52, 0.0 }
 0x177   : > { %1361 = vadd.xlane.f32.xlu1 %v1360_v35  ;;  %1358 = vadd.xlane.f32.xlu0 %v1357_v47  ;;  %v1904_v35 = vadd.s32 4294967248, %v3562_v62  ;;  %v1897_v47 = vadd.s32 4294967256, %v3562_v62  ;;  %v1142_v14 = vmul.f32 %v3258_v63, %v1008_v48  ;;  %v1041_v48 = vmax.f32 %v913_v16, 0.0 }
 0x178   : > { %v914_v16 = vadd.f32 %v3216_v44, %v3593_v22 }
 0x179   : > { %v3628_v7 = vsub.s32 %v1904_v35, %v3206_v39  ;;  %v3634_v32 = vsub.s32 %v1897_v47, %v3206_v39  ;;  %v1932_v35 = vadd.s32 4294967216, %v3562_v62  ;;  %v1396_v52 = vsel %vm434_vm0, %v1142_v14, 0.0 }
 0x17b   : > { %1367 = vadd.xlane.f32.xlu1 %v1366_v1  ;;  %1364 = vadd.xlane.f32.xlu0 %v1363_v6  ;;  %v3621_v1 = vsub.s32 %v1883_v29, %v3206_v39  ;;  %v1139_v6 = vmul.f32 %v3258_v63, %v1005_v34  ;;  %v3654_v34 = vsub.s32 %v1911_v10, %v3206_v39 }
 0x17c   : > { %v900_v10 = vadd.f32 %v3228_v51, %v3580_v11 }
 0x17d   : > { %v1387_v30 = vsel %vm434_vm0, %v1139_v6, 0.0  ;;  %v1027_v6 = vmax.f32 %v899_v24, 0.0 }
 0x17f   : > { %1373 = vadd.xlane.f32.xlu1 %v1372_v17  ;;  %1370 = vadd.xlane.f32.xlu0 %v1369_v18 }
 0x183   : > { %1379 = vadd.xlane.f32.xlu1 %v1378_v31  ;;  %1376 = vadd.xlane.f32.xlu0 %v1375_v40  ;;  %v1025_v31 = vmax.f32 %v897_v8, 0.0  ;;  %v1925_v40 = vadd.s32 4294967224, %v3562_v62 }
 0x184   : > { %v1209_v55 = vpop.xlane.xlu0 %1208  ;;  %v1215_v61 = vpop.xlane.xlu1 %1214 }
 0x185   : > { %v1600_v12 = vadd.f32 %v3589_v20, %v1209_v55  ;;  %v1602_v56 = vadd.f32 %v3589_v20, %v1215_v61  ;;  %v1159_v9 = vmul.f32 %v3258_v63, %v1025_v31  ;;  %v3678_v14 = vsub.s32 %v1925_v40, %v3206_v39 }
 0x186   : > { %v915_v31 = vadd.f32 %v3593_v22, %v3235_v54  ;;  %v1028_v40 = vmax.f32 %v900_v10, 0.0 }
 0x187   : > { %1385 = vadd.xlane.f32.xlu1 %v1384_v5  ;;  %1382 = vadd.xlane.f32.xlu0 %v1381_v42  ;;  %v1868_v53 = vrot.slane %v1600_v12, %v3602_v27  ;;  %v1880_v55 = vrot.slane %v1602_v56, %v3605_v28  ;;  %v1160_v5 = vmul.f32 %v3258_v63, %v1026_v59 }
 0x188   : > { %v1212_v17 = vpop.xlane.xlu0 %1211  ;;  %v1218_v18 = vpop.xlane.xlu1 %1217 }
 0x189   : > { %v1601_v26 = vadd.f32 %v3589_v20, %v1212_v17  ;;  %v1603_v29 = vadd.f32 %v3589_v20, %v1218_v18  ;;  %v1175_v17 = vmul.f32 %v3258_v63, %v1041_v48  ;;  %v1946_v18 = vadd.s32 4294967200, %v3562_v62 }
 0x18a   : > { %v1042_v48 = vmax.f32 %v914_v16, 0.0 }
 0x18b   : > { %v1873_v47 = vrot.slane %v1601_v26, %v3616_v45  ;;  %1391 = vadd.xlane.f32.xlu1 %v1390_v13  ;;  %1388 = vadd.xlane.f32.xlu0 %v1387_v30  ;;  %v1887_v42 = vrot.slane %v1603_v29, %v3621_v1  ;;  %v3675_v13 = vsub.s32 %v1932_v35, %v3206_v39  ;;  %v1953_v29 = vadd.s32 4294967192, %v3562_v62 }
 0x18c   : > { %v3662_v61 = vpop.xlane.xlu0 %1226  ;;  %v3664_v3 = vpop.xlane.xlu1 %1223  ;;  %v1161_v26 = vmul.f32 %v3258_v63, %v1027_v6  ;;  %v901_v30 = vadd.f32 %v3580_v11, %v3300_v38  ;;  %v1450_v35 = vsel %vm434_vm0, %v1160_v5, 0.0  ;;  %v1495_v6 = vsel %vm434_vm0, %v1175_v17, 0.0 }
 0x18d   : > { %v1875_v8 = vsel %vm1874_vm3, %v1873_v47, %v1868_v53  ;;  %v1890_v53 = vadd.s32 4294967264, %v3562_v62  ;;  %v902_v47 = vadd.f32 %v3249_v60, %v3580_v11  ;;  %v3709_v5 = vsub.s32 %v1946_v18, %v3206_v39 }
 0x18e   : > { %v1882_v12 = vsel %vm1881_vm4, %v1880_v55, %v1875_v8  ;;  %v916_v55 = vadd.f32 %v3228_v51, %v3593_v22  ;;  %v3712_v8 = vsub.s32 %v1939_v21, %v3206_v39  ;;  %v3722_v16 = vsub.s32 %v1953_v29, %v3206_v39 }
 0x18f   : > { %v3683_v56 = vsel %vm1888_vm5, %v1887_v42, %v1882_v12  ;;  %1397 = vadd.xlane.f32.xlu1 %v1396_v52  ;;  %1394 = vadd.xlane.f32.xlu0 %v1393_v4  ;;  %v1447_v52 = vsel %vm434_vm0, %v1159_v9, 0.0  ;;  %v917_v4 = vadd.f32 %v3593_v22, %v3300_v38  ;;  %v930_v42 = vadd.f32 %v3216_v44, %v3596_v23 }
 0x190   : > { %v3688_v59 = vpop.xlane.xlu0 %1232  ;;  %v3690_v24 = vpop.xlane.xlu1 %1229  ;;  %v1453_v12 = vsel %vm434_vm0, %v1161_v26, 0.0  ;;  %v1043_v17 = vmax.f32 %v915_v31, 0.0  ;;  %v1162_v18 = vmul.f32 %v3258_v63, %v1028_v40  ;;  %v1030_v21 = vmax.f32 %v902_v47, 0.0 }
 0x191   : > { %v903_v44 = vadd.f32 %v3580_v11, %v3209_v41  ;;  %v1176_v19 = vmul.f32 %v3258_v63, %v1042_v48  ;;  %v1044_v49 = vmax.f32 %v916_v55, 0.0  ;;  %v1045_v43 = vmax.f32 %v917_v4, 0.0 }
 0x192   : > { %v935_v26 = vadd.f32 %v3596_v23, %v3209_v41  ;;  %v1967_v29 = vadd.s32 4294967176, %v3562_v62  ;;  %v1058_v31 = vmax.f32 %v930_v42, 0.0  ;;  %v918_v40 = vadd.f32 %v3249_v60, %v3593_v22 }
 0x193   : > { %1451 = vadd.xlane.f32.xlu1 %v1450_v35  ;;  %1448 = vadd.xlane.f32.xlu0 %v1447_v52  ;;  %v1029_v35 = vmax.f32 %v901_v30, 0.0  ;;  %v3726_v52 = vsub.s32 %v1890_v53, %v3206_v39  ;;  %v1960_v30 = vadd.s32 4294967184, %v3562_v62  ;;  %v1177_v55 = vmul.f32 %v3258_v63, %v1043_v17 }
 0x194   : > { %v3716_v9 = vpop.xlane.xlu0 %1238  ;;  %v3718_v10 = vpop.xlane.xlu1 %1235  ;;  %v923_v4 = vadd.f32 %v3593_v22, %v3260_v0  ;;  %v1031_v62 = vmax.f32 %v903_v44, 0.0  ;;  %v1498_v42 = vsel %vm434_vm0, %v1176_v19, 0.0  ;;  %v1178_v60 = vmul.f32 %v3258_v63, %v1044_v49 }
 0x195   : > { %v1163_v48 = vmul.f32 %v3258_v63, %v1029_v35  ;;  %v1179_v38 = vmul.f32 %v3258_v63, %v1045_v43  ;;  %v1063_v51 = vmax.f32 %v935_v26, 0.0  ;;  %v3747_v35 = vsub.s32 %v1967_v29, %v3206_v39 }
 0x196   : > { %v3750_v17 = vsub.s32 %v1960_v30, %v3206_v39  ;;  %v1046_v49 = vmax.f32 %v918_v40, 0.0  ;;  %v1605_v43 = vadd.f32 %v3589_v20, %v3664_v3  ;;  %v1501_v26 = vsel %vm434_vm0, %v1177_v55, 0.0 }
 0x197   : > { %1496 = vadd.xlane.f32.xlu1 %v1495_v6  ;;  %1454 = vadd.xlane.f32.xlu0 %v1453_v12  ;;  %v1456_v6 = vsel %vm434_vm0, %v1162_v18, 0.0  ;;  %v1164_v12 = vmul.f32 %v3258_v63, %v1030_v21  ;;  %v3755_v18 = vld [vmem:[%s4413_s6] ss:$0 sm:$0xff]  ;;  %v1459_v44 = vsel %vm434_vm0, %v1163_v48, 0.0  ;;  %v1051_v39 = vmax.f32 %v923_v4, 0.0 }
 0x198   : > { %v1245_v53 = vpop.xlane.xlu0 %1244  ;;  %v1242_v47 = vpop.xlane.xlu1 %1241  ;;  %v1192_v19 = vmul.f32 %v3755_v18, %v1058_v31  ;;  %v1606_v29 = vadd.f32 %v3589_v20, %v3662_v61  ;;  %v1165_v40 = vmul.f32 %v3755_v18, %v1031_v62  ;;  %v1607_v3 = vadd.f32 %v3589_v20, %v3690_v24 }
 0x199   : > { %v1462_v31 = vsel %vm434_vm0, %v1164_v12, 0.0  ;;  %v1504_v48 = vsel %vm434_vm0, %v1178_v60, 0.0  ;;  %v1507_v55 = vsel %vm434_vm0, %v1179_v38, 0.0  ;;  %v1197_v4 = vmul.f32 %v3755_v18, %v1063_v51 }
 0x19a   : > { %v1608_v61 = vadd.f32 %v3589_v20, %v3688_v59  ;;  %v1546_v12 = vsel %vm434_vm0, %v1192_v19, 0.0  ;;  %v1180_v62 = vmul.f32 %v3755_v18, %v1046_v49  ;;  %v1901_v24 = vrot.slane %v1605_v43, %v3634_v32 }
 0x19b   : > { %1457 = vadd.xlane.f32.xlu1 %v1456_v6  ;;  %1499 = vadd.xlane.f32.xlu0 %v1498_v42  ;;  %v1609_v60 = vadd.f32 %v3589_v20, %v3718_v10  ;;  %v1185_v42 = vmul.f32 %v3755_v18, %v1051_v39  ;;  %v3783_v59 = vadd.f32 %v3203_v37, %v3580_v11 }
 0x19c   : > { %v1248_v63 = vpop.xlane.xlu1 %1247  ;;  %v1221_v21 = vpop.xlane.xlu0 %1220  ;;  %v1610_v19 = vadd.f32 %v3589_v20, %v3716_v9  ;;  %v3792_v10 = vadd.f32 %v3276_v15, %v3458_v57  ;;  %v1915_v43 = vrot.slane %v1607_v3, %v3654_v34 }
 0x19d   : > { %v1604_v30 = vadd.f32 %v3589_v20, %v1221_v21  ;;  %v1908_v21 = vrot.slane %v1606_v29, %v3628_v7  ;;  %v1922_v29 = vrot.slane %v1608_v61, %v3651_v33  ;;  %v1613_v3 = vadd.f32 %v3589_v20, %v1248_v63 }
 0x19e   : > { %v1936_v61 = vrot.slane %v1610_v19, %v3675_v13 }
 0x19f   : > { %v1894_v6 = vrot.slane %v1604_v30, %v3726_v52  ;;  %1460 = vadd.xlane.f32.xlu1 %v1459_v44  ;;  %1502 = vadd.xlane.f32.xlu0 %v1501_v26  ;;  %v1612_v44 = vadd.f32 %v3589_v20, %v1245_v53  ;;  %v1611_v26 = vadd.f32 %v3589_v20, %v1242_v47 }
 0x1a0   : > { %v1254_v38 = vpop.xlane.xlu1 %1253  ;;  %v1251_v51 = vpop.xlane.xlu0 %1250  ;;  %v919_v30 = vadd.f32 %v3593_v22, %v3209_v41 }
 0x1a1   : > { %v1896_v49 = vsel %vm1895_vm6, %v1894_v6, %v3683_v56  ;;  %v1465_v56 = vsel %vm434_vm0, %v1165_v40, 0.0  ;;  %v1929_v6 = vrot.slane %v1609_v60, %v3678_v14  ;;  %v1614_v47 = vadd.f32 %v3589_v20, %v1251_v51 }
 0x1a2   : > { %v1903_v39 = vsel %vm1902_vm7, %v1901_v24, %v1896_v49  ;;  %v1950_v41 = vrot.slane %v1612_v44, %v3709_v5  ;;  %v1943_v60 = vrot.slane %v1611_v26, %v3712_v8  ;;  %v1615_v63 = vadd.f32 %v3589_v20, %v1254_v38 }
 0x1a3   : > { %v1910_v9 = vsel %vm1909_vm8, %v1908_v21, %v1903_v39  ;;  %1463 = vadd.xlane.f32.xlu1 %v1462_v31  ;;  %1505 = vadd.xlane.f32.xlu0 %v1504_v48  ;;  %v1561_v39 = vsel %vm434_vm0, %v1197_v4, 0.0  ;;  %v1964_v26 = vrot.slane %v1614_v47, %v3750_v17  ;;  %v1022_v47 = vmax.f32 %v3792_v10, 0.0 }
 0x1a4   : > { %v1917_v53 = vsel %vm1916_vm9, %v1915_v43, %v1910_v9  ;;  %v1260_v24 = vpop.xlane.xlu1 %1259  ;;  %v1257_v49 = vpop.xlane.xlu0 %1256  ;;  %v1971_v4 = vrot.slane %v1615_v63, %v3747_v35  ;;  %v905_v10 = vadd.f32 %v3580_v11, %v3226_v50 }
 0x1a5   : > { %v1924_v31 = vsel %vm1923_vm10, %v1922_v29, %v1917_v53  ;;  %v1617_v48 = vadd.f32 %v3589_v20, %v1260_v24  ;;  %v1616_v40 = vadd.f32 %v3589_v20, %v1257_v49  ;;  %v1957_v29 = vrot.slane %v1613_v3, %v3722_v16 }
 0x1a6   : > { %v1931_v21 = vsel %vm1930_vm11, %v1929_v6, %v1924_v31  ;;  %v924_v6 = vadd.f32 %v3244_v58, %v3593_v22  ;;  %v1032_v49 = vmax.f32 %v3783_v59, 0.0  ;;  %v1047_v59 = vmax.f32 %v919_v30, 0.0 }
 0x1a7   : > { %v1938_v51 = vsel %vm1937_vm12, %v1936_v61, %v1931_v21  ;;  %v1981_v43 = vrot.slane %v1617_v48, %v3616_v45  ;;  %v1977_v19 = vrot.slane %v1616_v40, %v3602_v27  ;;  %1508 = vadd.xlane.f32.xlu1 %v1507_v55  ;;  %1547 = vadd.xlane.f32.xlu0 %v1546_v12  ;;  %v1510_v40 = vsel %vm434_vm0, %v1180_v62, 0.0 }
 0x1a8   : > { %v1945_v44 = vsel %vm4423_vm13, %v1943_v60, %v1938_v51  ;;  %v1266_v9 = vpop.xlane.xlu1 %1265  ;;  %v1263_v38 = vpop.xlane.xlu0 %1262  ;;  %v1525_v21 = vsel %vm434_vm0, %v1185_v42, 0.0  ;;  %v895_v62 = vadd.f32 %v3458_v57, %v3315_v2  ;;  %v1052_v42 = vmax.f32 %v924_v6, 0.0 }
 0x1a9   : > { %v1952_v53 = vsel %vm1951_vm14, %v1950_v41, %v1945_v44  ;;  %v1982_v24 = vsel %vm1874_vm3, %v1981_v43, %v1977_v19  ;;  %v1619_v55 = vadd.f32 %v3589_v20, %v1266_v9  ;;  %v1618_v12 = vadd.f32 %v3589_v20, %v1263_v38 }
 0x1aa   : > { %v1959_v3 = vsel %vm1958_vm15, %v1957_v29, %v1952_v53  ;;  %v1156_v29 = vmul.f32 %v3755_v18, %v1022_v47  ;;  %v1181_v38 = vmul.f32 %v3755_v18, %v1047_v59  ;;  %v1033_v53 = vmax.f32 %v905_v10, 0.0 }
 0x1ab   : > { %v1966_v61 = vsel %vm1965_vm1, %v1964_v26, %v1959_v3  ;;  %v1991_v31 = vrot.slane %v1619_v55, %v3621_v1  ;;  %v1986_v48 = vrot.slane %v1618_v12, %v3605_v28  ;;  %1466 = vadd.xlane.f32.xlu1 %v1465_v56  ;;  %1562 = vadd.xlane.f32.xlu0 %v1561_v39  ;;  %v1023_v3 = vmax.f32 %v895_v62, 0.0 }
 0x1ac   : > { %v3837_v41 = vsel %vm1972_vm2, %v1971_v4, %v1966_v61  ;;  %v1272_v60 = vpop.xlane.xlu1 %1271  ;;  %v1269_v63 = vpop.xlane.xlu0 %1268  ;;  %v1166_v39 = vmul.f32 %v3755_v18, %v1032_v49  ;;  %v925_v55 = vadd.f32 %v3593_v22, %v3284_v25  ;;  %v1438_v61 = vsel %vm434_vm0, %v1156_v29, 0.0 }
 0x1ad   : > { %v1987_v51 = vsel %vm1881_vm4, %v1986_v48, %v1982_v24  ;;  %v1621_v43 = vadd.f32 %v3589_v20, %v1272_v60  ;;  %v1620_v56 = vadd.f32 %v3589_v20, %v1269_v63  ;;  %v920_v24 = vadd.f32 %v3203_v37, %v3593_v22 }
 0x1ae   : > { %v1992_v19 = vsel %vm1888_vm5, %v1991_v31, %v1987_v51  ;;  %v1468_v47 = vsel %vm434_vm0, %v1166_v39, 0.0  ;;  %v1186_v31 = vmul.f32 %v3755_v18, %v1052_v42  ;;  %v1167_v59 = vmul.f32 %v3755_v18, %v1033_v53 }
 0x1af   : > { %v2001_v30 = vrot.slane %v1621_v43, %v3634_v32  ;;  %v1996_v44 = vrot.slane %v1620_v56, %v3726_v52  ;;  %1511 = vadd.xlane.f32.xlu1 %v1510_v40  ;;  %1526 = vadd.xlane.f32.xlu0 %v1525_v21  ;;  %v1513_v21 = vsel %vm434_vm0, %v1181_v38, 0.0  ;;  %v1048_v10 = vmax.f32 %v920_v24, 0.0 }
 0x1b0   : > { %v1278_v26 = vpop.xlane.xlu1 %1277  ;;  %v1275_v9 = vpop.xlane.xlu0 %1274  ;;  %v1053_v51 = vmax.f32 %v925_v55, 0.0  ;;  %v1528_v29 = vsel %vm434_vm0, %v1186_v31, 0.0  ;;  %v929_v42 = vadd.f32 %v3596_v23, %v3218_v46  ;;  %v1471_v53 = vsel %vm434_vm0, %v1167_v59, 0.0 }
 0x1b1   : > { %v1997_v12 = vsel %vm1895_vm6, %v1996_v44, %v1992_v19  ;;  %v1623_v6 = vadd.f32 %v3589_v20, %v1278_v26  ;;  %v1622_v4 = vadd.f32 %v3589_v20, %v1275_v9  ;;  %v1157_v19 = vmul.f32 %v3755_v18, %v1023_v3 }
 0x1b2   : > { %v2002_v49 = vsel %vm1902_vm7, %v2001_v30, %v1997_v12  ;;  %v896_v30 = vadd.f32 %v3298_v36, %v3458_v57  ;;  %v1182_v24 = vmul.f32 %v3755_v18, %v1048_v10  ;;  %v1187_v55 = vmul.f32 %v3755_v18, %v1053_v51  ;;  %v4436_v10 = vld [vmem:[#allocation13_spill] sm:$0xff] }
 0x1b3   : > { %v2011_v48 = vrot.slane %v1623_v6, %v3654_v34  ;;  %v2006_v40 = vrot.slane %v1622_v4, %v3628_v7  ;;  %1469 = vadd.xlane.f32.xlu1 %v1468_v47  ;;  %1439 = vadd.xlane.f32.xlu0 %v1438_v61  ;;  %v931_v46 = vadd.f32 %v3596_v23, %v3235_v54  ;;  %v1441_v3 = vsel %vm434_vm0, %v1157_v19, 0.0 }
 0x1b4   : > { %v1284_v60 = vpop.xlane.xlu1 %1283  ;;  %v1281_v63 = vpop.xlane.xlu0 %1280  ;;  %v1057_v47 = vmax.f32 %v929_v42, 0.0  ;;  %v1024_v61 = vmax.f32 %v896_v30, 0.0  ;;  %v926_v31 = vadd.f32 %v3276_v15, %v3593_v22  ;;  %v932_v51 = vadd.f32 %v4436_v10, %v3596_v23 }
 0x1b5   : > { %v2007_v43 = vsel %vm1909_vm8, %v2006_v40, %v2002_v49  ;;  %v1625_v56 = vadd.f32 %v3589_v20, %v1284_v60  ;;  %v1624_v62 = vadd.f32 %v3589_v20, %v1281_v63  ;;  %v1516_v63 = vsel %vm434_vm0, %v1182_v24, 0.0 }
 0x1b6   : > { %v2012_v39 = vsel %vm1916_vm9, %v2011_v48, %v2007_v43  ;;  %v1059_v59 = vmax.f32 %v931_v46, 0.0  ;;  %v912_v19 = vadd.f32 %v3298_v36, %v3580_v11  ;;  %v1158_v42 = vmul.f32 %v3755_v18, %v1024_v61 }
 0x1b7   : > { %v2021_v44 = vrot.slane %v1625_v56, %v3678_v14  ;;  %v2016_v26 = vrot.slane %v1624_v62, %v3651_v33  ;;  %1514 = vadd.xlane.f32.xlu1 %v1513_v21  ;;  %1529 = vadd.xlane.f32.xlu0 %v1528_v29  ;;  %v1531_v21 = vsel %vm434_vm0, %v1187_v55, 0.0  ;;  %v1191_v29 = vmul.f32 %v3755_v18, %v1057_v47  ;;  %v4437_v55 = vld [vmem:[#allocation15_spill] sm:$0xff] }
 0x1b8   : > { %v1290_v9 = vpop.xlane.xlu1 %1289  ;;  %v1287_v38 = vpop.xlane.xlu0 %1286  ;;  %v1054_v30 = vmax.f32 %v926_v31, 0.0  ;;  %v1060_v24 = vmax.f32 %v932_v51, 0.0  ;;  %v933_v46 = vadd.f32 %v3596_v23, %v4437_v55  ;;  %v1444_v31 = vsel %vm434_vm0, %v1158_v42, 0.0  ;;  %v4438_v42 = vld [vmem:[#allocation14_spill] sm:$0xff] }
 0x1b9   : > { %v2017_v12 = vsel %vm1923_vm10, %v2016_v26, %v2012_v39  ;;  %v1627_v6 = vadd.f32 %v3589_v20, %v1290_v9  ;;  %v1626_v4 = vadd.f32 %v3589_v20, %v1287_v38  ;;  %v1543_v61 = vsel %vm434_vm0, %v1191_v29, 0.0 }
 0x1ba   : > { %v2022_v49 = vsel %vm1930_vm11, %v2021_v44, %v2017_v12  ;;  %v942_v12 = vadd.f32 %v3276_v15, %v3596_v23  ;;  %v1061_v10 = vmax.f32 %v933_v46, 0.0 }
 0x1bb   : > { %v2031_v48 = vrot.slane %v1627_v6, %v3712_v8  ;;  %v2026_v40 = vrot.slane %v1626_v4, %v3675_v13  ;;  %1472 = vadd.xlane.f32.xlu1 %v1471_v53  ;;  %1442 = vadd.xlane.f32.xlu0 %v1441_v3  ;;  %v1193_v53 = vmul.f32 %v3755_v18, %v1059_v59 }
 0x1bc   : > { %v1296_v54 = vpop.xlane.xlu1 %1295  ;;  %v1293_v60 = vpop.xlane.xlu0 %1292  ;;  %v1194_v59 = vmul.f32 %v3755_v18, %v1060_v24  ;;  %v1070_v51 = vmax.f32 %v942_v12, 0.0  ;;  %v1195_v55 = vmul.f32 %v3755_v18, %v1061_v10 }
 0x1bd   : > { %v2027_v43 = vsel %vm1937_vm12, %v2026_v40, %v2022_v49  ;;  %v1629_v56 = vadd.f32 %v3589_v20, %v1296_v54  ;;  %v1628_v62 = vadd.f32 %v3589_v20, %v1293_v60  ;;  %v1040_v49 = vmax.f32 %v912_v19, 0.0 }
 0x1be   : > { %v2032_v39 = vsel %vm4423_vm13, %v2031_v48, %v2027_v43  ;;  %v1188_v48 = vmul.f32 %v3755_v18, %v1054_v30  ;;  %vm2527_vm13 = vcmask 1041409   ;;  %v934_v30 = vadd.f32 %v4438_v42, %v3596_v23 }
 0x1bf   : > { %v2041_v44 = vrot.slane %v1629_v56, %v3722_v16  ;;  %v2036_v26 = vrot.slane %v1628_v62, %v3709_v5  ;;  %1517 = vadd.xlane.f32.xlu1 %v1516_v63  ;;  %1532 = vadd.xlane.f32.xlu0 %v1531_v21  ;;  %v1549_v21 = vsel %vm434_vm0, %v1193_v53, 0.0  ;;  %v1174_v19 = vmul.f32 %v3755_v18, %v1040_v49 }
 0x1c0   : > { %v1302_v9 = vpop.xlane.xlu1 %1301  ;;  %v1299_v38 = vpop.xlane.xlu0 %1298  ;;  %v1534_v29 = vsel %vm434_vm0, %v1188_v48, 0.0  ;;  %v1204_v46 = vmul.f32 %v3755_v18, %v1070_v51  ;;  %v1062_v49 = vmax.f32 %v934_v30, 0.0 }
 0x1c1   : > { %v2037_v6 = vsel %vm1951_vm14, %v2036_v26, %v2032_v39  ;;  %v1631_v4 = vadd.f32 %v3589_v20, %v1302_v9  ;;  %v1630_v3 = vadd.f32 %v3589_v20, %v1299_v38 }
 0x1c2   : > { %v2042_v47 = vsel %vm1958_vm15, %v2041_v44, %v2037_v6  ;;  %v943_v44 = vadd.f32 %v3596_v23, %v3315_v2 }
 0x1c3   : > { %v2051_v40 = vrot.slane %v1631_v4, %v3747_v35  ;;  %v2046_v54 = vrot.slane %v1630_v3, %v3750_v17  ;;  %1544 = vadd.xlane.f32.xlu1 %v1543_v61  ;;  %1445 = vadd.xlane.f32.xlu0 %v1444_v31  ;;  %v1492_v3 = vsel %vm434_vm0, %v1174_v19, 0.0  ;;  %v4439_v61 = vld [vmem:[#allocation11_spill] sm:$0xff] }
 0x1c4   : > { %v1308_v60 = vpop.xlane.xlu1 %1307  ;;  %v1305_v63 = vpop.xlane.xlu0 %1304  ;;  %v906_v31 = vadd.f32 %v4439_v61, %v3580_v11 }
 0x1c5   : > { %v2047_v43 = vsel %vm1965_vm1, %v2046_v54, %v2042_v47  ;;  %v1633_v56 = vadd.f32 %v3589_v20, %v1308_v60  ;;  %v1632_v62 = vadd.f32 %v3589_v20, %v1305_v63  ;;  %v1071_v47 = vmax.f32 %v943_v44, 0.0 }
 0x1c6   : > { %v2052_v39 = vsel %vm1972_vm2, %v2051_v40, %v2047_v43  ;;  %v1555_v63 = vsel %vm434_vm0, %v1195_v55, 0.0  ;;  %v921_v43 = vadd.f32 %v3593_v22, %v3226_v50 }
 0x1c7   : > { %v3936_v26 = vsel %vm2527_vm13, %v2052_v39, %v3837_v41  ;;  %v2060_v9 = vrot.slane %v1633_v56, %v3616_v45  ;;  %v2056_v38 = vrot.slane %v1632_v62, %v3602_v27  ;;  %1550 = vadd.xlane.f32.xlu1 %v1549_v21  ;;  %1535 = vadd.xlane.f32.xlu0 %v1534_v29  ;;  %v1552_v41 = vsel %vm434_vm0, %v1194_v59, 0.0 }
 0x1c8   : > { %v1314_v53 = vpop.xlane.xlu1 %1313  ;;  %v1311_v24 = vpop.xlane.xlu0 %1310  ;;  %v1582_v21 = vsel %vm434_vm0, %v1204_v46, 0.0  ;;  %v1196_v62 = vmul.f32 %v3755_v18, %v1062_v49  ;;  %v1205_v19 = vmul.f32 %v3755_v18, %v1071_v47  ;;  %v1034_v39 = vmax.f32 %v906_v31, 0.0 }
 0x1c9   : > { %v2061_v12 = vsel %vm1874_vm3, %v2060_v9, %v2056_v38  ;;  %v1635_v6 = vadd.f32 %v3589_v20, %v1314_v53  ;;  %v1634_v4 = vadd.f32 %v3589_v20, %v1311_v24  ;;  %v936_v9 = vadd.f32 %v3203_v37, %v3596_v23 }
 0x1ca   : > { %v1049_v55 = vmax.f32 %v921_v43, 0.0  ;;  %vm4440_vm13 = vcmask 786112  }
 0x1cb   : > { %v2070_v48 = vrot.slane %v1635_v6, %v3621_v1  ;;  %v2065_v40 = vrot.slane %v1634_v4, %v3605_v28  ;;  %1553 = vadd.xlane.f32.xlu1 %v1552_v41  ;;  %1493 = vadd.xlane.f32.xlu0 %v1492_v3  ;;  %v1585_v6 = vsel %vm434_vm0, %v1205_v19, 0.0  ;;  %v1168_v4 = vmul.f32 %v3755_v18, %v1034_v39 }
 0x1cc   : > { %v1320_v54 = vpop.xlane.xlu1 %1319  ;;  %v1317_v60 = vpop.xlane.xlu0 %1316  ;;  %v922_v39 = vadd.f32 %v4439_v61, %v3593_v22 }
 0x1cd   : > { %v2066_v59 = vsel %vm1881_vm4, %v2065_v40, %v2061_v12  ;;  %v1637_v10 = vadd.f32 %v3589_v20, %v1320_v54  ;;  %v1636_v51 = vadd.f32 %v3589_v20, %v1317_v60  ;;  %v1558_v12 = vsel %vm434_vm0, %v1196_v62, 0.0 }
 0x1ce   : > { %v2071_v56 = vsel %vm1888_vm5, %v2070_v48, %v2066_v59  ;;  %v1064_v40 = vmax.f32 %v936_v9, 0.0  ;;  %v1474_v60 = vsel %vm434_vm0, %v1168_v4, 0.0 }
 0x1cf   : > { %v2080_v29 = vrot.slane %v1637_v10, %v3634_v32  ;;  %v2075_v42 = vrot.slane %v1636_v51, %v3726_v52  ;;  %1556 = vadd.xlane.f32.xlu1 %v1555_v63  ;;  %1583 = vadd.xlane.f32.xlu0 %v1582_v21  ;;  %v1183_v63 = vmul.f32 %v3755_v18, %v1049_v55 }
 0x1d0   : > { %v1326_v30 = vpop.xlane.xlu1 %1325  ;;  %v1323_v44 = vpop.xlane.xlu0 %1322  ;;  %v907_v21 = vadd.f32 %v3580_v11, %v3260_v0 }
 0x1d1   : > { %v2076_v38 = vsel %vm1895_vm6, %v2075_v42, %v2071_v56  ;;  %v1639_v53 = vadd.f32 %v3589_v20, %v1326_v30  ;;  %v1638_v24 = vadd.f32 %v3589_v20, %v1323_v44  ;;  %v1519_v42 = vsel %vm434_vm0, %v1183_v63, 0.0 }
 0x1d2   : > { %v2081_v46 = vsel %vm1902_vm7, %v2080_v29, %v2076_v38  ;;  %v1198_v30 = vmul.f32 %v3755_v18, %v1064_v40  ;;  %v1035_v44 = vmax.f32 %v907_v21, 0.0 }
 0x1d3   : > { %v2090_v41 = vrot.slane %v1639_v53, %v3654_v34  ;;  %v2085_v3 = vrot.slane %v1638_v24, %v3628_v7  ;;  %1559 = vadd.xlane.f32.xlu1 %v1558_v12  ;;  %1586 = vadd.xlane.f32.xlu0 %v1585_v6  ;;  %v937_v6 = vadd.f32 %v3596_v23, %v3226_v50 }
 0x1d4   : > { %v1332_v37 = vpop.xlane.xlu1 %1331  ;;  %v1329_v49 = vpop.xlane.xlu0 %1328 }
 0x1d5   : > { %v2086_v47 = vsel %vm1909_vm8, %v2085_v3, %v2081_v46  ;;  %v1641_v31 = vadd.f32 %v3589_v20, %v1332_v37  ;;  %v1640_v48 = vadd.f32 %v3589_v20, %v1329_v49  ;;  %v1169_v3 = vmul.f32 %v3755_v18, %v1035_v44 }
 0x1d6   : > { %v2091_v54 = vsel %vm1916_vm9, %v2090_v41, %v2086_v47  ;;  %v1564_v41 = vsel %vm434_vm0, %v1198_v30, 0.0  ;;  %v1050_v37 = vmax.f32 %v922_v39, 0.0 }
 0x1d7   : > { %v2100_v59 = vrot.slane %v1641_v31, %v3678_v14  ;;  %v2095_v10 = vrot.slane %v1640_v48, %v3651_v33  ;;  %1475 = vadd.xlane.f32.xlu1 %v1474_v60  ;;  %v1065_v60 = vmax.f32 %v937_v6, 0.0  ;;  %v1477_v21 = vsel %vm434_vm0, %v1169_v3, 0.0 }
 0x1d8   : > { %v1338_v51 = vpop.xlane.xlu1 %1337  ;;  %v1335_v43 = vpop.xlane.xlu0 %1334 }
 0x1d9   : > { %v2096_v56 = vsel %vm1923_vm10, %v2095_v10, %v2091_v54  ;;  %v1643_v62 = vadd.f32 %v3589_v20, %v1338_v51  ;;  %v1642_v19 = vadd.f32 %v3589_v20, %v1335_v43  ;;  %v893_v10 = vadd.f32 %v3458_v57, %v3284_v25 }
 0x1da   : > { %v2101_v29 = vsel %vm1930_vm11, %v2100_v59, %v2096_v56  ;;  %v1184_v59 = vmul.f32 %v3755_v18, %v1050_v37 }
 0x1db   : > { %v2110_v9 = vrot.slane %v1643_v62, %v3712_v8  ;;  %v2105_v38 = vrot.slane %v1642_v19, %v3675_v13  ;;  %1520 = vadd.xlane.f32.xlu1 %v1519_v42  ;;  %v1199_v42 = vmul.f32 %v3755_v18, %v1065_v60  ;;  %v1021_v44 = vmax.f32 %v893_v10, 0.0 }
 0x1dc   : > { %v1344_v53 = vpop.xlane.xlu1 %1343  ;;  %v1341_v24 = vpop.xlane.xlu0 %1340  ;;  %v1522_v57 = vsel %vm434_vm0, %v1184_v59, 0.0  ;;  %v909_v60 = vadd.f32 %v3580_v11, %v3284_v25 }
 0x1dd   : > { %v2106_v55 = vsel %vm1937_vm12, %v2105_v38, %v2101_v29  ;;  %v1645_v46 = vadd.f32 %v3589_v20, %v1344_v53  ;;  %v1644_v12 = vadd.f32 %v3589_v20, %v1341_v24  ;;  %v1155_v3 = vmul.f32 %v3755_v18, %v1021_v44 }
 0x1de   : > { %v2111_v4 = vsel %vm4440_vm13, %v2110_v9, %v2106_v55  ;;  %vm2529_vm13 = vcmask 1042434   ;;  %v908_v9 = vadd.f32 %v3244_v58, %v3580_v11  ;;  %v1037_v44 = vmax.f32 %v909_v60, 0.0 }
 0x1df   : > { %v2120_v49 = vrot.slane %v1645_v46, %v3722_v16  ;;  %v2115_v47 = vrot.slane %v1644_v12, %v3709_v5  ;;  %1565 = vadd.xlane.f32.xlu1 %v1564_v41  ;;  %v1567_v41 = vsel %vm434_vm0, %v1199_v42, 0.0 }
 0x1e0   : > { %v1350_v31 = vpop.xlane.xlu1 %1349  ;;  %v1347_v48 = vpop.xlane.xlu0 %1346  ;;  %v1036_v37 = vmax.f32 %v908_v9, 0.0 }
 0x1e1   : > { %v2116_v40 = vsel %vm1951_vm14, %v2115_v47, %v2111_v4  ;;  %v1647_v54 = vadd.f32 %v3589_v20, %v1350_v31  ;;  %v1646_v50 = vadd.f32 %v3589_v20, %v1347_v48 }
 0x1e2   : > { %v2121_v63 = vsel %vm1958_vm15, %v2120_v49, %v2116_v40 }
 0x1e3   : > { %v2130_v51 = vrot.slane %v1647_v54, %v3747_v35  ;;  %v2125_v43 = vrot.slane %v1646_v50, %v3750_v17  ;;  %1478 = vadd.xlane.f32.xlu1 %v1477_v21  ;;  %v1170_v21 = vmul.f32 %v3755_v18, %v1036_v37  ;;  %v910_v37 = vadd.f32 %v3276_v15, %v3580_v11 }
 0x1e4   : > { %v1404_v56 = vpop.xlane.xlu1 %1403  ;;  %v1401_v62 = vpop.xlane.xlu0 %1400 }
 0x1e5   : > { %v2126_v19 = vsel %vm1965_vm1, %v2125_v43, %v2121_v63  ;;  %v1665_v39 = vadd.f32 %v3589_v20, %v1404_v56  ;;  %v1664_v29 = vadd.f32 %v3589_v20, %v1401_v62 }
 0x1e6   : > { %v2131_v30 = vsel %vm1972_vm2, %v2130_v51, %v2126_v19 }
 0x1e7   : > { %v4023_v38 = vsel %vm2529_vm13, %v2131_v30, %v3936_v26  ;;  %v2218_v53 = vrot.slane %v1665_v39, %v3616_v45  ;;  %v2214_v24 = vrot.slane %v1664_v29, %v3602_v27  ;;  %1523 = vadd.xlane.f32.xlu1 %v1522_v57  ;;  %v938_v26 = vadd.f32 %v4439_v61, %v3596_v23 }
 0x1e8   : > { %v1410_v55 = vpop.xlane.xlu1 %1409  ;;  %v1407_v46 = vpop.xlane.xlu0 %1406  ;;  %v1435_v61 = vsel %vm434_vm0, %v1155_v3, 0.0  ;;  %v939_v29 = vadd.f32 %v3596_v23, %v3260_v0  ;;  %v1480_v30 = vsel %vm434_vm0, %v1170_v21, 0.0  ;;  %v1171_v3 = vmul.f32 %v3755_v18, %v1037_v44 }
 0x1e9   : > { %v2219_v12 = vsel %vm1874_vm3, %v2218_v53, %v2214_v24  ;;  %v1667_v6 = vadd.f32 %v3589_v20, %v1410_v55  ;;  %v1666_v4 = vadd.f32 %v3589_v20, %v1407_v46  ;;  %v1066_v59 = vmax.f32 %v938_v26, 0.0 }
 0x1ea   : > { %v1483_v15 = vsel %vm434_vm0, %v1171_v3, 0.0  ;;  %vm4441_vm13 = vcmask 786112  }
 0x1eb   : > { %v2228_v49 = vrot.slane %v1667_v6, %v3621_v1  ;;  %v2223_v47 = vrot.slane %v1666_v4, %v3605_v28  ;;  %1568 = vadd.xlane.f32.xlu1 %v1567_v41  ;;  %v1200_v57 = vmul.f32 %v3755_v18, %v1066_v59  ;;  %v1067_v6 = vmax.f32 %v939_v29, 0.0 }
 0x1ec   : > { %v1416_v31 = vpop.xlane.xlu1 %1415  ;;  %v1413_v48 = vpop.xlane.xlu0 %1412 }
 0x1ed   : > { %v2224_v40 = vsel %vm1881_vm4, %v2223_v47, %v2219_v12  ;;  %v1669_v54 = vadd.f32 %v3589_v20, %v1416_v31  ;;  %v1668_v50 = vadd.f32 %v3589_v20, %v1413_v48  ;;  %v1570_v41 = vsel %vm434_vm0, %v1200_v57, 0.0 }
 0x1ee   : > { %v2229_v63 = vsel %vm1888_vm5, %v2228_v49, %v2224_v40 }
 0x1ef   : > { %v2238_v10 = vrot.slane %v1669_v54, %v3634_v32  ;;  %v2233_v51 = vrot.slane %v1668_v50, %v3726_v52  ;;  %1436 = vadd.xlane.f32.xlu1 %v1435_v61  ;;  %v940_v50 = vadd.f32 %v3244_v58, %v3596_v23  ;;  %v1038_v61 = vmax.f32 %v910_v37, 0.0 }
 0x1f0   : > { %v1422_v43 = vpop.xlane.xlu1 %1421  ;;  %v1419_v56 = vpop.xlane.xlu0 %1418 }
 0x1f1   : > { %v2234_v62 = vsel %vm1895_vm6, %v2233_v51, %v2229_v63  ;;  %v1671_v19 = vadd.f32 %v3589_v20, %v1422_v43  ;;  %v1670_v39 = vadd.f32 %v3589_v20, %v1419_v56  ;;  %v1201_v63 = vmul.f32 %v3755_v18, %v1067_v6 }
 0x1f2   : > { %v2239_v42 = vsel %vm1902_vm7, %v2238_v10, %v2234_v62  ;;  %v911_v62 = vadd.f32 %v3580_v11, %v3315_v2  ;;  %v1068_v29 = vmax.f32 %v940_v50, 0.0 }
 0x1f3   : > { %v2248_v9 = vrot.slane %v1671_v19, %v3654_v34  ;;  %v2243_v53 = vrot.slane %v1670_v39, %v3628_v7  ;;  %1481 = vadd.xlane.f32.xlu1 %v1480_v30  ;;  %v1573_v19 = vsel %vm434_vm0, %v1201_v63, 0.0  ;;  %v1172_v39 = vmul.f32 %v3755_v18, %v1038_v61 }
 0x1f4   : > { %v1428_v24 = vpop.xlane.xlu1 %1427  ;;  %v1425_v55 = vpop.xlane.xlu0 %1424 }
 0x1f5   : > { %v2244_v46 = vsel %vm1909_vm8, %v2243_v53, %v2239_v42  ;;  %v1673_v12 = vadd.f32 %v3589_v20, %v1428_v24  ;;  %v1672_v0 = vadd.f32 %v3589_v20, %v1425_v55  ;;  %v1039_v55 = vmax.f32 %v911_v62, 0.0 }
 0x1f6   : > { %v2249_v4 = vsel %vm1916_vm9, %v2248_v9, %v2244_v46  ;;  %v1486_v46 = vsel %vm434_vm0, %v1172_v39, 0.0 }
 0x1f7   : > { %v2258_v26 = vrot.slane %v1673_v12, %v3678_v14  ;;  %v2253_v49 = vrot.slane %v1672_v0, %v3651_v33  ;;  %1571 = vadd.xlane.f32.xlu1 %v1570_v41  ;;  %v1202_v12 = vmul.f32 %v3755_v18, %v1068_v29  ;;  %v941_v0 = vadd.f32 %v3596_v23, %v3284_v25 }
 0x1f8   : > { %v1434_v47 = vpop.xlane.xlu1 %1433  ;;  %v1431_v31 = vpop.xlane.xlu0 %1430 }
 0x1f9   : > { %v2254_v48 = vsel %vm1923_vm10, %v2253_v49, %v2249_v4  ;;  %v1675_v40 = vadd.f32 %v3589_v20, %v1434_v47  ;;  %v1674_v54 = vadd.f32 %v3589_v20, %v1431_v31  ;;  %v1173_v47 = vmul.f32 %v3755_v18, %v1039_v55 }
 0x1fa   : > { %v2259_v60 = vsel %vm1930_vm11, %v2258_v26, %v2254_v48  ;;  %v1576_v48 = vsel %vm434_vm0, %v1202_v12, 0.0  ;;  %v1069_v25 = vmax.f32 %v941_v0, 0.0 }
 0x1fb   : > { %v2268_v21 = vrot.slane %v1675_v40, %v3712_v8  ;;  %v2263_v59 = vrot.slane %v1674_v54, %v3675_v13  ;;  %1484 = vadd.xlane.f32.xlu1 %v1483_v15  ;;  %v927_v40 = vadd.f32 %v3593_v22, %v3315_v2  ;;  %v1489_v2 = vsel %vm434_vm0, %v1173_v47, 0.0 }
 0x1fc   : > { %v1356_v10 = vpop.xlane.xlu1 %1355  ;;  %v1353_v51 = vpop.xlane.xlu0 %1352 }
 0x1fd   : > { %v2264_v43 = vsel %vm1937_vm12, %v2263_v59, %v2259_v60  ;;  %v1649_v56 = vadd.f32 %v3589_v20, %v1356_v10  ;;  %v1648_v58 = vadd.f32 %v3589_v20, %v1353_v51  ;;  %v928_v59 = vadd.f32 %v3298_v36, %v3593_v22 }
 0x1fe   : > { %v4084_v42 = vsel %vm4441_vm13, %v2268_v21, %v2264_v43  ;;  %v1203_v51 = vmul.f32 %v3755_v18, %v1069_v25  ;;  %v1055_v43 = vmax.f32 %v927_v40, 0.0 }
 0x1ff   : > { %v2139_v30 = vrot.slane %v1649_v56, %v3616_v45  ;;  %v2135_v57 = vrot.slane %v1648_v58, %v3602_v27  ;;  %1574 = vadd.xlane.f32.xlu1 %v1573_v19 }
 0x200   : > { %v1362_v44 = vpop.xlane.xlu1 %1361  ;;  %v1359_v9 = vpop.xlane.xlu0 %1358 }
 0x201   : > { %v2140_v53 = vsel %vm1874_vm3, %v2139_v30, %v2135_v57  ;;  %v1651_v24 = vadd.f32 %v3589_v20, %v1362_v44  ;;  %v1650_v11 = vadd.f32 %v3589_v20, %v1359_v9  ;;  %v944_v30 = vadd.f32 %v3298_v36, %v3596_v23 }
 0x202   : > { %v1579_v44 = vsel %vm434_vm0, %v1203_v51, 0.0  ;;  %v1189_v9 = vmul.f32 %v3755_v18, %v1055_v43 }
 0x203   : > { %v2149_v6 = vrot.slane %v1651_v24, %v3621_v1  ;;  %v2144_v4 = vrot.slane %v1650_v11, %v3605_v28  ;;  %1487 = vadd.xlane.f32.xlu1 %v1486_v46 }
 0x204   : > { %v1368_v41 = vpop.xlane.xlu1 %1367  ;;  %v1365_v3 = vpop.xlane.xlu0 %1364 }
 0x205   : > { %v2145_v37 = vsel %vm1881_vm4, %v2144_v4, %v2140_v53  ;;  %v1653_v26 = vadd.f32 %v3589_v20, %v1368_v41  ;;  %v1652_v49 = vadd.f32 %v3589_v20, %v1365_v3  ;;  %v1056_v53 = vmax.f32 %v928_v59, 0.0 }
 0x206   : > { %v2150_v31 = vsel %vm1888_vm5, %v2149_v6, %v2145_v37  ;;  %v1537_v6 = vsel %vm434_vm0, %v1189_v9, 0.0  ;;  %v1072_v41 = vmax.f32 %v944_v30, 0.0 }
 0x207   : > { %v2159_v54 = vrot.slane %v1653_v26, %v3634_v32  ;;  %v2154_v50 = vrot.slane %v1652_v49, %v3726_v52  ;;  %1577 = vadd.xlane.f32.xlu1 %v1576_v48  ;;  %v1190_v4 = vmul.f32 %v3755_v18, %v1056_v53 }
 0x208   : > { %v1374_v60 = vpop.xlane.xlu1 %1373  ;;  %v1371_v15 = vpop.xlane.xlu0 %1370 }
 0x209   : > { %v2155_v63 = vsel %vm1895_vm6, %v2154_v50, %v2150_v31  ;;  %v1655_v61 = vadd.f32 %v3589_v20, %v1374_v60  ;;  %v1654_v21 = vadd.f32 %v3589_v20, %v1371_v15  ;;  %v1540_v40 = vsel %vm434_vm0, %v1190_v4, 0.0 }
 0x20a   : > { %v2160_v10 = vsel %vm1902_vm7, %v2159_v54, %v2155_v63  ;;  %v1206_v54 = vmul.f32 %v3755_v18, %v1072_v41 }
 0x20b   : > { %v2169_v56 = vrot.slane %v1655_v61, %v3654_v34  ;;  %v2164_v58 = vrot.slane %v1654_v21, %v3628_v7  ;;  %1490 = vadd.xlane.f32.xlu1 %v1489_v2 }
 0x20c   : > { %v1380_v62 = vpop.xlane.xlu1 %1379  ;;  %v1377_v19 = vpop.xlane.xlu0 %1376  ;;  %v1588_v2 = vsel %vm434_vm0, %v1206_v54, 0.0  ;;  %vm2533_vm0 = vcmask 1044484  }
 0x20d   : > { %v2165_v39 = vsel %vm1909_vm8, %v2164_v58, %v2160_v10  ;;  %v1657_v29 = vadd.f32 %v3589_v20, %v1380_v62  ;;  %v1656_v22 = vadd.f32 %v3589_v20, %v1377_v19 }
 0x20e   : > { %v2170_v57 = vsel %vm1916_vm9, %v2169_v56, %v2165_v39 }
 0x20f   : > { %v2179_v24 = vrot.slane %v1657_v29, %v3678_v14  ;;  %v2174_v11 = vrot.slane %v1656_v22, %v3651_v33  ;;  %1580 = vadd.xlane.f32.xlu1 %v1579_v44 }
 0x210   : > { %v1386_v55 = vpop.xlane.xlu1 %1385  ;;  %v1383_v46 = vpop.xlane.xlu0 %1382 }
 0x211   : > { %v2175_v12 = vsel %vm1923_vm10, %v2174_v11, %v2170_v57  ;;  %v1659_v0 = vadd.f32 %v3589_v20, %v1386_v55  ;;  %v1658_v36 = vadd.f32 %v3589_v20, %v1383_v46 }
 0x212   : > { %v2180_v23 = vsel %vm1930_vm11, %v2179_v24, %v2175_v12 }
 0x213   : > { %v2189_v3 = vrot.slane %v1659_v0, %v3712_v8  ;;  %v2184_v37 = vrot.slane %v1658_v36, %v3675_v13  ;;  %1538 = vadd.xlane.f32.xlu1 %v1537_v6 }
 0x214   : > { %v1392_v26 = vpop.xlane.xlu1 %1391  ;;  %v1389_v49 = vpop.xlane.xlu0 %1388 }
 0x215   : > { %v2185_v47 = vsel %vm1937_vm12, %v2184_v37, %v2180_v23  ;;  %v1661_v31 = vadd.f32 %v3589_v20, %v1392_v26  ;;  %v1660_v48 = vadd.f32 %v3589_v20, %v1389_v49 }
 0x216   : > { %v2190_v25 = vsel %vm4441_vm13, %v2189_v3, %v2185_v47  ;;  %vm2531_vm13 = vcmask 1043459  }
 0x217   : > { %v2199_v50 = vrot.slane %v1661_v31, %v3722_v16  ;;  %v2194_v60 = vrot.slane %v1660_v48, %v3709_v5  ;;  %1541 = vadd.xlane.f32.xlu1 %v1540_v40 }
 0x218   : > { %v1398_v15 = vpop.xlane.xlu1 %1397  ;;  %v1395_v63 = vpop.xlane.xlu0 %1394 }
 0x219   : > { %v2195_v61 = vsel %vm1951_vm14, %v2194_v60, %v2190_v25  ;;  %v1663_v21 = vadd.f32 %v3589_v20, %v1398_v15  ;;  %v1662_v59 = vadd.f32 %v3589_v20, %v1395_v63 }
 0x21a   : > { %v2200_v10 = vsel %vm1958_vm15, %v2199_v50, %v2195_v61 }
 0x21b   : > { %v2209_v51 = vrot.slane %v1663_v21, %v3747_v35  ;;  %v2204_v18 = vrot.slane %v1662_v59, %v3750_v17  ;;  %1589 = vadd.xlane.f32.xlu1 %v1588_v2 }
 0x21c   : > { %v1452_v43 = vpop.xlane.xlu1 %1451  ;;  %v1449_v56 = vpop.xlane.xlu0 %1448 }
 0x21d   : > { %v2205_v58 = vsel %vm1965_vm1, %v2204_v18, %v2200_v10  ;;  %v1681_v39 = vadd.f32 %v3589_v20, %v1452_v43  ;;  %v1680_v29 = vadd.f32 %v3589_v20, %v1449_v56 }
 0x21e   : > { %v2210_v62 = vsel %vm1972_vm2, %v2209_v51, %v2205_v58 }
 0x21f   : > { %v4153_v19 = vsel %vm2531_vm13, %v2210_v62, %v4023_v38  ;;  %v2297_v44 = vrot.slane %v1681_v39, %v3616_v45  ;;  %v2293_v9 = vrot.slane %v1680_v29, %v3602_v27 }
 0x220   : > { %v1497_v22 = vpop.xlane.xlu1 %1496  ;;  %v1455_v30 = vpop.xlane.xlu0 %1454 }
 0x221   : > { %v1682_v57 = vadd.f32 %v3589_v20, %v1455_v30  ;;  %v2298_v38 = vsel %vm1874_vm3, %v2297_v44, %v2293_v9  ;;  %v1696_v37 = vadd.f32 %v3589_v20, %v1497_v22 }
 0x223   : > { %v2302_v53 = vrot.slane %v1682_v57, %v3605_v28  ;;  %v2372_v50 = vrot.slane %v1696_v37, %v3602_v27 }
 0x224   : > { %v1458_v24 = vpop.xlane.xlu1 %1457  ;;  %v1500_v11 = vpop.xlane.xlu0 %1499 }
 0x225   : > { %v1683_v55 = vadd.f32 %v3589_v20, %v1458_v24  ;;  %v2303_v12 = vsel %vm1881_vm4, %v2302_v53, %v2298_v38  ;;  %v1697_v4 = vadd.f32 %v3589_v20, %v1500_v11 }
 0x227   : > { %v2307_v46 = vrot.slane %v1683_v55, %v3621_v1  ;;  %v2376_v25 = vrot.slane %v1697_v4, %v3616_v45 }
 0x228   : > { %v1461_v0 = vpop.xlane.xlu1 %1460  ;;  %v1503_v36 = vpop.xlane.xlu0 %1502 }
 0x229   : > { %v2308_v23 = vsel %vm1888_vm5, %v2307_v46, %v2303_v12  ;;  %v1684_v6 = vadd.f32 %v3589_v20, %v1461_v0  ;;  %v1698_v3 = vadd.f32 %v3589_v20, %v1503_v36  ;;  %v2377_v21 = vsel %vm1874_vm3, %v2376_v25, %v2372_v50 }
 0x22b   : > { %v2312_v41 = vrot.slane %v1684_v6, %v3726_v52  ;;  %v2381_v40 = vrot.slane %v1698_v3, %v3605_v28 }
 0x22c   : > { %v1464_v26 = vpop.xlane.xlu1 %1463  ;;  %v1506_v49 = vpop.xlane.xlu0 %1505 }
 0x22d   : > { %v2313_v47 = vsel %vm1895_vm6, %v2312_v41, %v2308_v23  ;;  %v1685_v31 = vadd.f32 %v3589_v20, %v1464_v26  ;;  %v1699_v48 = vadd.f32 %v3589_v20, %v1506_v49  ;;  %v2382_v59 = vsel %vm1881_vm4, %v2381_v40, %v2377_v21 }
 0x22f   : > { %v2317_v54 = vrot.slane %v1685_v31, %v3634_v32  ;;  %v2386_v60 = vrot.slane %v1699_v48, %v3621_v1 }
 0x230   : > { %v1509_v15 = vpop.xlane.xlu1 %1508  ;;  %v1548_v6 = vpop.xlane.xlu0 %1547 }
 0x231   : > { %v2318_v63 = vsel %vm1902_vm7, %v2317_v54, %v2313_v47  ;;  %v1700_v61 = vadd.f32 %v3589_v20, %v1509_v15  ;;  %v2387_v2 = vsel %vm1888_vm5, %v2386_v60, %v2382_v59  ;;  %v1713_v26 = vadd.f32 %v3589_v20, %v1548_v6 }
 0x233   : > { %v2391_v10 = vrot.slane %v1700_v61, %v3726_v52  ;;  %v2455_v48 = vrot.slane %v1713_v26, %v3616_v45 }
 0x234   : > { %v1467_v51 = vpop.xlane.xlu1 %1466  ;;  %v1563_v25 = vpop.xlane.xlu0 %1562 }
 0x235   : > { %v2392_v18 = vsel %vm1895_vm6, %v2391_v10, %v2387_v2  ;;  %v1686_v43 = vadd.f32 %v3589_v20, %v1467_v51 }
 0x237   : > { %v2322_v56 = vrot.slane %v1686_v43, %v3628_v7 }
 0x238   : > { %v1512_v58 = vpop.xlane.xlu1 %1511  ;;  %v1527_v21 = vpop.xlane.xlu0 %1526 }
 0x239   : > { %v2323_v62 = vsel %vm1909_vm8, %v2322_v56, %v2318_v63  ;;  %v1701_v39 = vadd.f32 %v3589_v20, %v1512_v58 }
 0x23b   : > { %v2396_v29 = vrot.slane %v1701_v39, %v3634_v32 }
 0x23c   : > { %v1470_v22 = vpop.xlane.xlu1 %1469  ;;  %v1440_v2 = vpop.xlane.xlu0 %1439 }
 0x23d   : > { %v2397_v30 = vsel %vm1902_vm7, %v2396_v29, %v2392_v18  ;;  %v1687_v57 = vadd.f32 %v3589_v20, %v1470_v22 }
 0x23f   : > { %v2327_v44 = vrot.slane %v1687_v57, %v3654_v34 }
 0x240   : > { %v1515_v9 = vpop.xlane.xlu1 %1514  ;;  %v1530_v43 = vpop.xlane.xlu0 %1529 }
 0x241   : > { %v2328_v53 = vsel %vm1916_vm9, %v2327_v44, %v2323_v62  ;;  %v1702_v24 = vadd.f32 %v3589_v20, %v1515_v9 }
 0x243   : > { %v2401_v11 = vrot.slane %v1702_v24, %v3628_v7 }
 0x244   : > { %v1473_v55 = vpop.xlane.xlu1 %1472  ;;  %v1443_v58 = vpop.xlane.xlu0 %1442 }
 0x245   : > { %v2402_v38 = vsel %vm1909_vm8, %v2401_v11, %v2397_v30  ;;  %v1688_v46 = vadd.f32 %v3589_v20, %v1473_v55  ;;  %v1677_v30 = vadd.f32 %v3589_v20, %v1440_v2 }
 0x247   : > { %v2332_v12 = vrot.slane %v1688_v46, %v3651_v33  ;;  %v2278_v24 = vrot.slane %v1677_v30, %v3722_v16 }
 0x248   : > { %v1518_v0 = vpop.xlane.xlu1 %1517  ;;  %v1533_v39 = vpop.xlane.xlu0 %1532 }
 0x249   : > { %v4201_v36 = vsel %vm1923_vm10, %v2332_v12, %v2328_v53  ;;  %v1703_v23 = vadd.f32 %v3589_v20, %v1518_v0 }
 0x24b   : > { %v2406_v4 = vrot.slane %v1703_v23, %v3654_v34 }
 0x24c   : > { %v1545_v41 = vpop.xlane.xlu1 %1544  ;;  %v1446_v22 = vpop.xlane.xlu0 %1445 }
 0x24d   : > { %v4206_v3 = vsel %vm1916_vm9, %v2406_v4, %v2402_v38  ;;  %v1712_v37 = vadd.f32 %v3589_v20, %v1545_v41  ;;  %v1679_v9 = vadd.f32 %v3589_v20, %v1446_v22 }
 0x24f   : > { %v2451_v49 = vrot.slane %v1712_v37, %v3602_v27  ;;  %v2288_v46 = vrot.slane %v1679_v9, %v3747_v35 }
 0x250   : > { %v1551_v47 = vpop.xlane.xlu1 %1550  ;;  %v1536_v26 = vpop.xlane.xlu0 %1535 }
 0x251   : > { %v1714_v31 = vadd.f32 %v3589_v20, %v1551_v47  ;;  %v2456_v54 = vsel %vm1874_vm3, %v2455_v48, %v2451_v49  ;;  %vm2535_vm3 = vcmask 1045509  }
 0x253   : > { %v2460_v40 = vrot.slane %v1714_v31, %v3605_v28 }
 0x254   : > { %v1554_v50 = vpop.xlane.xlu1 %1553 }
 0x255   : > { %v2461_v60 = vsel %vm1881_vm4, %v2460_v40, %v2456_v54  ;;  %v1715_v15 = vadd.f32 %v3589_v20, %v1554_v50  ;;  %v1718_v40 = vadd.f32 %v3589_v20, %v1563_v25  ;;  %vm4442_vm4 = vcmask 786112  }
 0x257   : > { %v2465_v63 = vrot.slane %v1715_v15, %v3621_v1  ;;  %v2480_v2 = vrot.slane %v1718_v40, %v3628_v7 }
 0x258   : > { %v1557_v61 = vpop.xlane.xlu1 %1556 }
 0x259   : > { %v2466_v27 = vsel %vm1888_vm5, %v2465_v63, %v2461_v60  ;;  %v1716_v59 = vadd.f32 %v3589_v20, %v1557_v61  ;;  %v1494_v61 = vpop.xlane.xlu0 %1493  ;;  %vm4443_vm5 = vmmov %vm4442_vm4 }
 0x25b   : > { %v2470_v45 = vrot.slane %v1716_v59, %v3726_v52  ;;  %v1678_v52 = vadd.f32 %v3589_v20, %v1443_v58  ;;  %v1695_v58 = vadd.f32 %v3589_v20, %v1494_v61 }
 0x25c   : > { %v1560_v10 = vpop.xlane.xlu1 %1559 }
 0x25d   : > { %v4222_v28 = vsel %vm1895_vm6, %v2470_v45, %v2466_v27  ;;  %v2283_v55 = vrot.slane %v1678_v52, %v3750_v17  ;;  %v1717_v27 = vadd.f32 %v3589_v20, %v1560_v10  ;;  %v1707_v52 = vadd.f32 %v3589_v20, %v1530_v43  ;;  %vm4444_vm6 = vmmov %vm4442_vm4 }
 0x25f   : > { %v2475_v22 = vrot.slane %v1717_v27, %v3634_v32 }
 0x260   : > { %v1476_v51 = vpop.xlane.xlu1 %1475 }
 0x261   : > { %v1689_v49 = vadd.f32 %v3589_v20, %v1476_v51 }
 0x263   : > { %v2337_v60 = vrot.slane %v1689_v49, %v3678_v14  ;;  %v2426_v49 = vrot.slane %v1707_v52, %v3712_v8 }
 0x264   : > { %v1521_v18 = vpop.xlane.xlu1 %1520 }
 0x265   : > { %v1704_v31 = vadd.f32 %v3589_v20, %v1521_v18  ;;  %v2338_v10 = vsel %vm1930_vm11, %v2337_v60, %v4201_v36 }
 0x267   : > { %v2411_v45 = vrot.slane %v1704_v31, %v3651_v33 }
 0x268   : > { %v1566_v56 = vpop.xlane.xlu1 %1565 }
 0x269   : > { %v1719_v30 = vadd.f32 %v3589_v20, %v1566_v56 }
 0x26c   : > { %v1479_v62 = vpop.xlane.xlu1 %1478 }
 0x270   : > { %v1524_v1 = vpop.xlane.xlu1 %1523 }
 0x271   : > { %v1705_v54 = vadd.f32 %v3589_v20, %v1524_v1 }
 0x273   : > { %v2416_v51 = vrot.slane %v1705_v54, %v3678_v14 }
 0x274   : > { %v1569_v29 = vpop.xlane.xlu1 %1568 }
 0x275   : > { %v1720_v9 = vadd.f32 %v3589_v20, %v1569_v29  ;;  %v1584_v29 = vpop.xlane.xlu0 %1583 }
 0x278   : > { %v1437_v57 = vpop.xlane.xlu1 %1436 }
 0x279   : > { %v1676_v44 = vadd.f32 %v3589_v20, %v1437_v57  ;;  %v1587_v60 = vpop.xlane.xlu0 %1586 }
 0x27b   : > { %v2273_v53 = vrot.slane %v1676_v44, %v3709_v5  ;;  %v2412_v44 = vsel %vm1923_vm10, %v2411_v45, %v4206_v3  ;;  %v1726_v45 = vadd.f32 %v3589_v20, %v1587_v60 }
 0x27c   : > { %v1482_v11 = vpop.xlane.xlu1 %1481 }
 0x27d   : > { %v2274_v38 = vsel %vm1951_vm14, %v2273_v53, %v4084_v42  ;;  %v1690_v42 = vadd.f32 %v3589_v20, %v1479_v62  ;;  %v1691_v48 = vadd.f32 %v3589_v20, %v1482_v11  ;;  %v2417_v53 = vsel %vm1930_vm11, %v2416_v51, %v2412_v44 }
 0x27e   : > { %v2279_v12 = vsel %vm1958_vm15, %v2278_v24, %v2274_v38  ;;  %v1708_v11 = vadd.f32 %v3589_v20, %v1533_v39  ;;  %v2490_v39 = vrot.slane %v1720_v9, %v3651_v33 }
 0x27f   : > { %v2284_v0 = vsel %vm1965_vm1, %v2283_v55, %v2279_v12  ;;  %v2342_v59 = vrot.slane %v1690_v42, %v3675_v13  ;;  %v2347_v25 = vrot.slane %v1691_v48, %v3712_v8  ;;  %v2367_v55 = vrot.slane %v1695_v58, %v3747_v35  ;;  %v4446_v58 = vld [vmem:[#allocation10_spill] sm:$0xff] }
 0x280   : > { %v2289_v23 = vsel %vm1972_vm2, %v2288_v46, %v2284_v0  ;;  %v1572_v6 = vpop.xlane.xlu1 %1571  ;;  %v2476_v46 = vsel %vm1902_vm7, %v2475_v22, %v4222_v28  ;;  %v2485_v12 = vrot.slane %v1719_v30, %v3654_v34  ;;  %v1709_v34 = vadd.f32 %v3589_v20, %v1536_v26 }
 0x281   : > { %v2534_v4 = vsel %vm2533_vm0, %v2289_v23, %v4153_v19  ;;  %v1706_v19 = vadd.f32 %v3589_v20, %v1527_v21  ;;  %v2343_v7 = vsel %vm1937_vm12, %v2342_v59, %v2338_v10  ;;  %v1721_v24 = vadd.f32 %v3589_v20, %v1572_v6 }
 0x282   : > { %v2348_v36 = vsel %vm4442_vm4, %v2347_v25, %v2343_v7  ;;  %v2481_v42 = vsel %vm1909_vm8, %v2480_v2, %v2476_v46  ;;  %v2436_v27 = vrot.slane %v1709_v34, %v3722_v16  ;;  %vm2537_vm7 = vcmask 1046534  }
 0x283   : > { %v2421_v18 = vrot.slane %v1706_v19, %v3675_v13  ;;  %v2486_v33 = vsel %vm1916_vm9, %v2485_v12, %v2481_v42  ;;  %v1725_v19 = vadd.f32 %v3589_v20, %v1584_v29  ;;  %v2520_v7 = vrot.slane %v1726_v45, %v3750_v17 }
 0x284   : > { %v1485_v41 = vpop.xlane.xlu1 %1484  ;;  %vm2539_vm8 = vcmask 1047559  }
 0x285   : > { %v1692_v50 = vadd.f32 %v3589_v20, %v1485_v41  ;;  %v2422_v6 = vsel %vm1937_vm12, %v2421_v18, %v2417_v53  ;;  %v2515_v2 = vrot.slane %v1725_v19, %v3722_v16  ;;  %v4445_v18 = vld [vmem:[#allocation12_spill] sm:$0xff] }
 0x286   : > { %v2427_v40 = vsel %vm4443_vm5, %v2426_v49, %v2422_v6  ;;  %v1733_v10 = vrot.slane %v4446_v58, %v4445_v18 }
 0x287   : > { %v2352_v21 = vrot.slane %v1692_v50, %v3709_v5 }
 0x288   : > { %v1575_v37 = vpop.xlane.xlu1 %1574  ;;  %vm1734_vm9 = vcmp.eq.s32.totalorder %v1733_v10, 1 }
 0x289   : > { %v2353_v32 = vsel %vm1951_vm14, %v2352_v21, %v2348_v36  ;;  %v1722_v43 = vadd.f32 %v3589_v20, %v1575_v37 }
 0x28b   : > { %v2500_v31 = vrot.slane %v1722_v43, %v3675_v13 }
 0x28c   : > { %v1488_v47 = vpop.xlane.xlu1 %1487 }
 0x28d   : > { %v1693_v15 = vadd.f32 %v3589_v20, %v1488_v47  ;;  %v2495_v47 = vrot.slane %v1721_v24, %v3678_v14  ;;  %v2431_v14 = vrot.slane %v1708_v11, %v3709_v5 }
 0x28f   : > { %v2357_v62 = vrot.slane %v1693_v15, %v3722_v16 }
 0x290   : > { %v1578_v63 = vpop.xlane.xlu1 %1577 }
 0x291   : > { %v2358_v3 = vsel %vm1958_vm15, %v2357_v62, %v2353_v32  ;;  %v1723_v0 = vadd.f32 %v3589_v20, %v1578_v63  ;;  %v2432_v63 = vsel %vm1951_vm14, %v2431_v14, %v2427_v40 }
 0x292   : > { %v2437_v51 = vsel %vm1958_vm15, %v2436_v27, %v2432_v63 }
 0x293   : > { %v2505_v54 = vrot.slane %v1723_v0, %v3712_v8 }
 0x294   : > { %v1491_v1 = vpop.xlane.xlu1 %1490 }
 0x295   : > { %v1694_v57 = vadd.f32 %v3589_v20, %v1491_v1 }
 0x297   : > { %v2362_v56 = vrot.slane %v1694_v57, %v3750_v17 }
 0x298   : > { %v1581_v38 = vpop.xlane.xlu1 %1580 }
 0x299   : > { %v2363_v23 = vsel %vm1965_vm1, %v2362_v56, %v2358_v3  ;;  %v1724_v37 = vadd.f32 %v3589_v20, %v1581_v38 }
 0x29a   : > { %v2368_v41 = vsel %vm1972_vm2, %v2367_v55, %v2363_v23 }
 0x29b   : > { %v2536_v28 = vsel %vm2535_vm3, %v2368_v41, %v2534_v4  ;;  %v2491_v4 = vsel %vm1923_vm10, %v2490_v39, %v2486_v33  ;;  %v2510_v26 = vrot.slane %v1724_v37, %v3709_v5 }
 0x29c   : > { %v1539_v48 = vpop.xlane.xlu1 %1538  ;;  %v2496_v13 = vsel %vm1930_vm11, %v2495_v47, %v2491_v4 }
 0x29d   : > { %v1710_v50 = vadd.f32 %v3589_v20, %v1539_v48  ;;  %v2501_v15 = vsel %vm1937_vm12, %v2500_v31, %v2496_v13 }
 0x29e   : > { %v2506_v59 = vsel %vm4444_vm6, %v2505_v54, %v2501_v15 }
 0x29f   : > { %v2441_v61 = vrot.slane %v1710_v50, %v3750_v17  ;;  %v2511_v25 = vsel %vm1951_vm14, %v2510_v26, %v2506_v59 }
 0x2a0   : > { %v1542_v8 = vpop.xlane.xlu1 %1541  ;;  %v2516_v22 = vsel %vm1958_vm15, %v2515_v2, %v2511_v25 }
 0x2a1   : > { %v1711_v5 = vadd.f32 %v3589_v20, %v1542_v8  ;;  %v2442_v62 = vsel %vm1965_vm1, %v2441_v61, %v2437_v51  ;;  %v2521_v44 = vsel %vm1965_vm1, %v2520_v7, %v2516_v22 }
 0x2a3   : > { %v2446_v21 = vrot.slane %v1711_v5, %v3747_v35 }
 0x2a4   : > { %v1590_v1 = vpop.xlane.xlu1 %1589 }
 0x2a5   : > { %v2447_v30 = vsel %vm1972_vm2, %v2446_v21, %v2442_v62  ;;  %v1727_v16 = vadd.f32 %v3589_v20, %v1590_v1 }
 0x2a6   : > { %v2538_v57 = vsel %vm2537_vm7, %v2447_v30, %v2536_v28 }
 0x2a7   : > { %v2525_v52 = vrot.slane %v1727_v16, %v3747_v35 }
 0x2a9   : > { %v2526_v9 = vsel %vm1972_vm2, %v2525_v52, %v2521_v44 }
 0x2aa   : > { %v2540_v36 = vsel %vm2539_vm8, %v2526_v9, %v2538_v57 }
 0x2ab   : > { %v2542_v20 = vsel %vm1734_vm9, %v2540_v36, -10000.0 }
 0x2ac   : > { %2543 = vst [vmem:[%s390_s26] sm:$0xff] %v2542_v20  ;;  %v2746_v35 = vmul.f32 -1.442695, %v2542_v20 }
 0x2ad   : > { %2914 = shalt.err (!%p2911_p5)
}
 0x2ae   : > { %s2915_s26 = scalar_lea.hbm %s4334_s28, 128  ;;  %s2919_s7 = scalar_lea.hbm %s4415_s8, 256 }
 0x2af   : > { %p2916_p6 = scmp.ne.s32.totalorder %s4334_s28, %s2915_s26  ;;  %p2920_p10 = scmp.lt.s32.totalorder %s4334_s28, %s4415_s8 }
 0x2b0   : > { %p2921_p11 = scmp.lt.s32.totalorder %s2919_s7, %s2915_s26 }
 0x2b1   : > { %p2917_p7 = pnand %p2916_p6, %p3108_p4 }
 0x2b2   : > { %p2922_p12 = por %p2921_p11, %p2920_p10 }
 0x2b3   : > { %p2918_p9 = pneg %p2917_p7 }
 0x2b5   : > { %p2923_p13 = pnand %p2922_p12, %p2918_p9 }
 0x2b7   : > { %2926 = shalt.err (!%p2923_p13)
}
 0x2b8   : > { %2830 = dma.vmem_to_hbm [thread:$0]  (%p3108_p4), %s4336_s27, 128, %s4334_s28, %s2552_s30   ;;  %2896 = vpow2.f32 %v2746_v35 }
 0x2b9   : > { %s4447_s25 = sshll.u32 %s4305_s21, 3  ;;  %s4448_s10 = sshll.u32 %s2999_s14, 7 }
 0x2ba   : > { %s397_s0 = scalar_lea.vmem [#allocation6], %s4447_s25  ;;  %s4366_s26 = scalar_lea.hbm %s4416_s9, %s4448_s10 }
 0x2bb   : > { %s2585_s24 = sshll.u32 %s397_s0, 4  ;;  %s2557_s19 = scalar_lea.sflag [#allocation7], %s4305_s21  ;;  %s2586_s24 = int_to_ptr.vmem [resolvable:$true] %s2585_s24 }
 0x2bc   : > { %s2927_s7 = scalar_lea.vmem %s2586_s24, 128  ;;  %s3014_s27 = smov [#allocation6]  }
 0x2bd   : > { %p2928_p0 = scmp.ne.s32.totalorder %s2586_s24, %s2927_s7  ;;  %s2931_s28 = sshll.u32 %s3014_s27, 4  ;;  %s2932_s28 = int_to_ptr.vmem [resolvable:$false] %s2931_s28 }
 0x2be   : > { %s2933_s30 = scalar_lea.vmem %s2932_s28, 256  ;;  %p2934_p3 = scmp.lt.s32.totalorder %s2586_s24, %s2932_s28 }
 0x2bf   : > { %p2929_p1 = pnand %p2928_p0, %p3108_p4  ;;  %p2935_p5 = scmp.lt.s32.totalorder %s2933_s30, %s2927_s7 }
 0x2c1   : > { %p2930_p2 = pneg %p2929_p1  ;;  %p2936_p6 = por %p2935_p5, %p2934_p3 }
 0x2c3   : > { %p2937_p7 = pnand %p2936_p6, %p2930_p2 }
 0x2c5   : > { %v2897_v17 = vpop.eup %2896 }
 0x2c6   : > { %v2547_v53 = vadd.f32 1.0, %v2897_v17 }
 0x2c8   : > { %2898 = vrcp.f32 %v2547_v53 }
 0x2d5   : > { %v2899_v24 = vpop.eup %2898 }
 0x2d6   : > { %2550 = vst [vmem:[%s397_s0] sm:$0xff] %v2899_v24 }
 0x2d7   : > { %2940 = shalt.err (!%p2937_p7)
}
 0x2d8   : > { %s2941_s14 = scalar_lea.hbm %s4366_s26, 128  ;;  %s2945_s0 = scalar_lea.hbm %s4416_s9, 256 }
 0x2d9   : > { %p2942_p9 = scmp.ne.s32.totalorder %s4366_s26, %s2941_s14  ;;  %p2946_p12 = scmp.lt.s32.totalorder %s4366_s26, %s4416_s9 }
 0x2da   : > { %p2947_p13 = scmp.lt.s32.totalorder %s2945_s0, %s2941_s14 }
 0x2db   : > { %p2943_p10 = pnand %p2942_p9, %p3108_p4 }
 0x2dc   : > { %p2948_p0 = por %p2947_p13, %p2946_p12 }
 0x2dd   : > { %p2944_p11 = pneg %p2943_p10 }
 0x2df   : > { %p2949_p1 = pnand %p2948_p0, %p2944_p11 }
 0x2e1   : > { %2952 = shalt.err (!%p2949_p1)
}
 0x2e2   : > { %2831 = dma.vmem_to_hbm [thread:$0]  (%p3108_p4), %s2586_s24, 128, %s4366_s26, %s2557_s19  }
 0x2e3 PF: > { %p2841_p2 = scmp.ge.s32.totalorder %s3007_s16, 2  ;;  %s2597_s29 = sand.u32 1, %s2987_s11  }
 0x2e4   : > { %s2598_s7 = scalar_lea.sflag [#allocation5], %s2597_s29 }
 0x2e5   : > { %p2835_p3 = pnand %p2841_p2, %p3115_p8 }
 0x2e7   : > { %p2836_p5 = pneg %p2835_p3 }
 0x2e9   : > { %2978 = dma.done.wait (%p2836_p5), %s2598_s7, 128  }
 0x2ea   : > { %2980 = vsyncadd (%p2836_p5), %s2598_s7, 4294967168  ;;  %s2607_s27 = scalar_lea.sflag [#allocation7], %s2597_s29 }
 0x2eb   : > { %2982 = dma.done.wait (%p2836_p5), %s2607_s27, 128  }
 0x2ec   : > { %2984 = vsyncadd (%p2836_p5), %s2607_s27, 4294967168  ;;  %s28_s16 = sadd.s32 1, %s3007_s16   ;;  %s4449_s11 = smov %s2991_s12 }
 0x2ed   : > { %p25_p6 = scmp.ge.s32.totalorder %s28_s16, 4   ;;  %s4450_s12 = smov %s2995_s13 }
 0x2ee   : > { %s4451_s13 = smov %s3121_s23  ;;  %s4452_s14 = smov %s3003_s15 }
 0x2ef   : > { %s4453_s15 = smov %s4455_s18  ;;  %27 = sbr.rel (!%p25_p6) target bundleno = 9 (0x9), region = 114 }
 0x2f4   :  { %2612 = vsyncpa [#allocation5], 1 }
 0x2f5   :  { %2614 = vsyncpa [#allocation5 + $0x1], 1 }
 0x2f6   :  { %2615 = vsyncpa [#allocation7], 1 }
 0x2f7   :  { %2617 = vsyncpa [#allocation7 + $0x1], 1 }

</bundles_post_ra>
